<compile_context>
chip_gen: v7x
topology: tpu7x:2x2x1
jax: 0.10.0
libtpu: 0.0.40
codegen_flags: <defaults>
</compile_context>

<pallas_src>
import functools
import numpy as np
import jax
import jax.numpy as jnp
from jax import lax
from jax.experimental import pallas as pl
from jax.experimental.pallas import tpu as pltpu

H = 128              # BERT hidden size (fixed by nn.Linear(128, num_labels))
NUM_HEADS = 2
HEAD_DIM = H // NUM_HEADS
FFN = 4 * H
VOCAB = 50
MAX_SEQ = 8
NUM_LABELS1 = 5      # config['num_labels1']
NUM_LABELS2 = 7      # config['num_labels2']
IGNORE_INDEX = -100  # torch.nn.CrossEntropyLoss default ignore_index
PADC = 128           # lane-dense padded classifier width (per head)
VOCAB_PAD = 64       # word one-hot columns (>= VOCAB)
POS_PAD = 64         # position one-hot columns (>= MAX_SEQ)
EMB_K = VOCAB_PAD + POS_PAD   # combined one-hot width (lane aligned: 128)

assert VOCAB <= VOCAB_PAD and MAX_SEQ <= POS_PAD


# --------------------------- fused Pallas kernel ---------------------------

def _ner_fused_kernel(ids_ref, tgt_ref, bias_ref, valid_ref,
                      emb_ref, wqkv_ref, bqkv_ref, wo_ref, bo_ref,
                      w1_ref, b1_ref, w2_ref, b2_ref, ln_ref,
                      wc_ref, bc_ref,
                      logits_ref, loss_ref, *, batch, seq):
    bs = batch * seq
    ln = ln_ref[...]                                     # [6, H]: 3x (gamma, beta)

    def layer_norm(v, g, b):
        mu = jnp.mean(v, axis=-1, keepdims=True)
        var = jnp.mean(jnp.square(v - mu), axis=-1, keepdims=True)
        return (v - mu) * lax.rsqrt(var + 1e-12) * g + b

    # ---- embedding gather as in-kernel one-hot matmul (word + position) ----
    ids = ids_ref[...]                                   # [B, S] int32
    cols = lax.broadcasted_iota(jnp.int32, (batch, seq, EMB_K), 2)
    pos = lax.broadcasted_iota(jnp.int32, (batch, seq, EMB_K), 1)
    # two-hot rows: column ids[b,s] (word) and column VOCAB_PAD + s (position)
    onehot = ((cols == ids[:, :, None]) | (cols == pos + VOCAB_PAD))
    onehot = onehot.astype(jnp.float32).reshape(bs, EMB_K).astype(jnp.bfloat16)
    x = jnp.dot(onehot, emb_ref[...], preferred_element_type=jnp.float32)
    x = layer_norm(x, ln[0:1], ln[1:2])

    # ---- fused QKV projection: one [bs,128]@[128,384] MXU pass ----
    qkv = jnp.dot(x.astype(jnp.bfloat16), wqkv_ref[...],
                  preferred_element_type=jnp.float32) + bqkv_ref[...]

    # ---- multi-head self-attention, flat 2-D with block-diagonal bias ----
    bias = bias_ref[...]                                 # [bs, bs] f32 (0 / -1e9)
    q_all = qkv[:, :H]                                   # 128-lane aligned slices
    k_all = qkv[:, H:2 * H]
    v_all = qkv[:, 2 * H:]
    scale = 1.0 / float(HEAD_DIM) ** 0.5
    attn = bo_ref[...]                                   # [1, H]; broadcasts over rows
    for h in range(NUM_HEADS):                           # NH=2, unrolled at trace time
        lo = h * HEAD_DIM
        hi = lo + HEAD_DIM
        q_h = q_all[:, lo:hi].astype(jnp.bfloat16)
        k_h = k_all[:, lo:hi].astype(jnp.bfloat16)
        v_h = v_all[:, lo:hi].astype(jnp.bfloat16)
        s = jnp.einsum('qd,kd->qk', q_h, k_h,
                       preferred_element_type=jnp.float32) * scale + bias
        s = s - jnp.max(s, axis=-1, keepdims=True)
        p = jnp.exp(s)
        p = p * pl.reciprocal(jnp.sum(p, axis=-1, keepdims=True), approx=True)
        ctx = jnp.dot(p.astype(jnp.bfloat16), v_h,
                      preferred_element_type=jnp.float32)          # [bs, 64]
        # head merge folded into output projection: ctx @ Wo == sum_h ctx_h @ Wo_h
        attn = attn + jnp.dot(ctx.astype(jnp.bfloat16), wo_ref[lo:hi, :],
                              preferred_element_type=jnp.float32)
    x = layer_norm(x + attn, ln[2:3], ln[3:4])

    # ---- FFN ----
    hmid = jnp.dot(x.astype(jnp.bfloat16), w1_ref[...],
                   preferred_element_type=jnp.float32) + b1_ref[...]
    hmid = jax.nn.gelu(hmid, approximate=True)
    ffn = jnp.dot(hmid.astype(jnp.bfloat16), w2_ref[...],
                  preferred_element_type=jnp.float32) + b2_ref[...]
    x = layer_norm(x + ffn, ln[4:5], ln[5:6])
    # x == pooler (Dropout(0.1) is identity in eval / deterministic mode)

    # ---- both classifiers in one lane-dense matmul ([bs,128]@[128,256]) ----
    # padded label columns carry a -1e30 f32 bias, so they vanish under logsumexp.
    logits = jnp.dot(x.astype(jnp.bfloat16), wc_ref[...],
                     preferred_element_type=jnp.float32) + bc_ref[...]
    logits_ref[...] = logits                             # lane-dense store, [bs, 256]

    # ---- masked cross-entropy for both heads ----
    # label one-hot built in-kernel from raw [B,S] targets (iota compare +
    # leading-dim merge reshape; last dim stays 128 so the reshape is free).
    tgt = tgt_ref[...]                                   # [B, S] int32
    lcols = lax.broadcasted_iota(jnp.int32, (batch, seq, PADC), 2)
    label_oh = (lcols == tgt[:, :, None]).astype(jnp.float32).reshape(bs, PADC)
    valid = valid_ref[...]                               # [bs, 2]: (mask & class==1/2)

    def head_loss(lg, v):
        mx = jnp.max(lg, axis=-1, keepdims=True)
        lse = mx + jnp.log(jnp.sum(jnp.exp(lg - mx), axis=-1, keepdims=True))
        picked = jnp.sum(lg * label_oh, axis=-1, keepdims=True)
        per_tok = (lse - picked) * v
        # Note: torch CrossEntropyLoss(mean) returns NaN when every token is
        # ignored; here that (and the class-absent case) yields 0.0 instead,
        # matching the module's explicit `loss = 0.0` branch for empty heads.
        denom = jnp.maximum(jnp.sum(v), 1.0)
        return jnp.sum(per_tok) / denom

    loss_ref[0, 0] = head_loss(logits[:, :PADC], valid[:, 0:1])
    loss_ref[0, 1] = head_loss(logits[:, PADC:], valid[:, 1:2])


# ------------------------------ model params -------------------------------

def init_params(key):
    ks = jax.random.split(key, 10)
    w = lambda k, shape: 0.02 * jax.random.normal(k, shape, dtype=jnp.float32)
    zeros = lambda *s: jnp.zeros(s, jnp.float32)

    word_emb = w(ks[0], (VOCAB, H))
    pos_emb = w(ks[1], (MAX_SEQ, H))
    wq, wk, wv = w(ks[2], (H, H)), w(ks[3], (H, H)), w(ks[4], (H, H))
    wc1, wc2 = w(ks[8], (H, NUM_LABELS1)), w(ks[9], (H, NUM_LABELS2))

    # combined word+position embedding table for the in-kernel one-hot matmul
    emb = jnp.zeros((EMB_K, H), jnp.float32)
    emb = emb.at[:VOCAB].set(word_emb)
    emb = emb.at[VOCAB_PAD:VOCAB_PAD + MAX_SEQ].set(pos_emb)

    # fused + lane-padded classifier weights; padded columns get -1e30 f32 bias
    wc = jnp.zeros((H, 2 * PADC), jnp.float32)
    wc = wc.at[:, :NUM_LABELS1].set(wc1).at[:, PADC:PADC + NUM_LABELS2].set(wc2)
    bc = jnp.full((1, 2 * PADC), -1e30, jnp.float32)
    bc = bc.at[0, :NUM_LABELS1].set(0.0).at[0, PADC:PADC + NUM_LABELS2].set(0.0)

    ln = jnp.stack([jnp.ones(H, jnp.float32), jnp.zeros(H, jnp.float32)] * 3)

    bf16 = lambda a: a.astype(jnp.bfloat16)              # MXU weights in bf16
    return {
        "emb": bf16(emb),                                 # [128, H] bf16
        "ln": ln,                                         # [6, H]  f32
        "wqkv": bf16(jnp.concatenate([wq, wk, wv], axis=1)),   # [H, 3H] bf16
        "bqkv": zeros(1, 3 * H),
        "wo": bf16(w(ks[5], (H, H))), "bo": zeros(1, H),
        "w1": bf16(w(ks[6], (H, FFN))), "b1": zeros(1, FFN),
        "w2": bf16(w(ks[7], (FFN, H))), "b2": zeros(1, H),
        "wc": bf16(wc), "bc": bc,                         # bias stays f32 (-1e30 pad)
    }


# ----------------------------- forward (glue) ------------------------------

def _forward_device_impl(params, input_ids, attention_mask, targets, classes):
    B, S = input_ids.shape
    bs = B * S
    # Tiny wrapper-side prep (one small XLA fusion, review-sanctioned):
    #  * [bs,bs] block-diagonal additive attention bias (batch separation +
    #    key mask), built once instead of per-head in-kernel broadcasts.
    #  * per-head token validity weights: attention_mask AND classes==k.
    mask_flat = attention_mask.reshape(bs).astype(jnp.float32)
    batch_ids = jnp.repeat(jnp.arange(B, dtype=jnp.int32), S)
    same_batch = batch_ids[:, None] == batch_ids[None, :]
    attn_bias = jnp.where(same_batch & (mask_flat[None, :] > 0.5),
                          0.0, -1e9).astype(jnp.float32)            # [bs, bs]
    cls_flat = jnp.repeat(classes.astype(jnp.int32), S)             # [bs]
    valid = jnp.stack([mask_flat * (cls_flat == 1),
                       mask_flat * (cls_flat == 2)], axis=1).astype(jnp.float32)

    logits_pad, losses = pl.pallas_call(
        functools.partial(_ner_fused_kernel, batch=B, seq=S),
        out_shape=(jax.ShapeDtypeStruct((bs, 2 * PADC), jnp.float32),
                   jax.ShapeDtypeStruct((1, 2), jnp.float32)),
        in_specs=[pl.BlockSpec(memory_space=pltpu.MemorySpace.VMEM)] * 16,
        out_specs=(pl.BlockSpec(memory_space=pltpu.MemorySpace.VMEM),
                   pl.BlockSpec(memory_space=pltpu.MemorySpace.SMEM)),
    )(input_ids.astype(jnp.int32), targets.astype(jnp.int32), attn_bias, valid,
      params["emb"], params["wqkv"], params["bqkv"], params["wo"], params["bo"],
      params["w1"], params["b1"], params["w2"], params["b2"],
      params["ln"], params["wc"], params["bc"])
    return logits_pad.reshape(B, S, 2 * PADC), losses[0, 0], losses[0, 1]


_forward_device = jax.jit(_forward_device_impl)


def ner_forward(params, input_ids, attention_mask, targets, classes):
    B, S = input_ids.shape
    logits_pad, loss1, loss2 = _forward_device(
        params, input_ids, attention_mask, targets, classes)

    mask1 = classes == 1
    mask2 = classes == 2
    # Dynamic-shape boolean row selection (`pooler[classes == k]`) cannot live
    # under jit; it runs host-side AFTER all device work has been enqueued.
    classes_np = np.asarray(classes)
    idx1 = jnp.asarray(np.nonzero(classes_np == 1)[0], dtype=jnp.int32)
    idx2 = jnp.asarray(np.nonzero(classes_np == 2)[0], dtype=jnp.int32)
    output1 = logits_pad[idx1, :, :NUM_LABELS1]
    output2 = logits_pad[idx2, :, PADC:PADC + NUM_LABELS2]
    return output1, output2, mask1, mask2, loss1, loss2


if __name__ == "__main__":
    key = jax.random.PRNGKey(0)
    kp, k_ids, k_tgt = jax.random.split(key, 3)
    params = init_params(kp)

    B, S = 4, MAX_SEQ
    input_ids = jax.random.randint(k_ids, (B, S), 0, VOCAB, dtype=jnp.int32)
    attention_mask = jnp.array([[1] * 8,
                                [1] * 6 + [0] * 2,
                                [1] * 7 + [0] * 1,
                                [1] * 5 + [0] * 3], dtype=jnp.int32)
    targets = jax.random.randint(k_tgt, (B, S), 0,
                                 min(NUM_LABELS1, NUM_LABELS2), dtype=jnp.int32)
    classes = jnp.array([1, 2, 1, 2], dtype=jnp.int32)

    outs = ner_forward(params, input_ids, attention_mask, targets, classes)
    jax.block_until_ready(outs)

    o1, o2, m1, m2, l1, l2 = outs
    assert o1.shape == (2, S, NUM_LABELS1) and o2.shape == (2, S, NUM_LABELS2)
    assert m1.shape == (B,) and m2.shape == (B,)
    assert jnp.isfinite(l1) and jnp.isfinite(l2)
    print("KERNEL_OK")
</pallas_src>

<mosaic_0001>
module attributes {stable_mosaic.version = 11 : i64} {
  func.func @_ner_fused_kernel(%arg0: memref<4x8xi32, #tpu.memory_space<vmem>>, %arg1: memref<4x8xi32, #tpu.memory_space<vmem>>, %arg2: memref<32x32xf32, #tpu.memory_space<vmem>>, %arg3: memref<32x2xf32, #tpu.memory_space<vmem>>, %arg4: memref<128x128xbf16, #tpu.memory_space<vmem>>, %arg5: memref<128x384xbf16, #tpu.memory_space<vmem>>, %arg6: memref<1x384xf32, #tpu.memory_space<vmem>>, %arg7: memref<128x128xbf16, #tpu.memory_space<vmem>>, %arg8: memref<1x128xf32, #tpu.memory_space<vmem>>, %arg9: memref<128x512xbf16, #tpu.memory_space<vmem>>, %arg10: memref<1x512xf32, #tpu.memory_space<vmem>>, %arg11: memref<512x128xbf16, #tpu.memory_space<vmem>>, %arg12: memref<1x128xf32, #tpu.memory_space<vmem>>, %arg13: memref<6x128xf32, #tpu.memory_space<vmem>>, %arg14: memref<128x256xbf16, #tpu.memory_space<vmem>>, %arg15: memref<1x256xf32, #tpu.memory_space<vmem>>, %arg16: memref<32x256xf32, #tpu.memory_space<vmem>>, %arg17: memref<1x2xf32, #tpu.memory_space<smem>>) attributes {dimension_semantics = [], scalar_prefetch = 0 : i64, scratch_operands = 0 : i64, tpu.core_type = #tpu.core_type<tc>} {
    %c0 = arith.constant 0 : index
    %c0_0 = arith.constant 0 : index
    %0 = vector.load %arg13[%c0, %c0_0] : memref<6x128xf32, #tpu.memory_space<vmem>>, vector<6x128xf32>
    %c0_1 = arith.constant 0 : index
    %c0_2 = arith.constant 0 : index
    %1 = vector.load %arg0[%c0_1, %c0_2] : memref<4x8xi32, #tpu.memory_space<vmem>>, vector<4x8xi32>
    %2 = tpu.iota {dimensions = array<i32: 2>} : vector<4x8x128xi32>
    %3 = tpu.iota {dimensions = array<i32: 1>} : vector<4x8x128xi32>
    %4 = vector.shape_cast %1 : vector<4x8xi32> to vector<4x8x1xi32>
    %5 = vector.broadcast %4 : vector<4x8x1xi32> to vector<4x8x128xi32>
    %6 = arith.cmpi eq, %2, %5 : vector<4x8x128xi32>
    %c64_i32 = arith.constant 64 : i32
    %7 = vector.broadcast %c64_i32 : i32 to vector<4x8x128xi32>
    %8 = arith.addi %3, %7 : vector<4x8x128xi32>
    %9 = arith.cmpi eq, %2, %8 : vector<4x8x128xi32>
    %10 = arith.ori %6, %9 : vector<4x8x128xi1>
    %11 = arith.extui %10 : vector<4x8x128xi1> to vector<4x8x128xi32>
    %12 = arith.sitofp %11 : vector<4x8x128xi32> to vector<4x8x128xf32>
    %13 = vector.shape_cast %12 : vector<4x8x128xf32> to vector<32x128xf32>
    %14 = arith.truncf %13 : vector<32x128xf32> to vector<32x128xbf16>
    %c0_3 = arith.constant 0 : index
    %c0_4 = arith.constant 0 : index
    %15 = vector.load %arg4[%c0_3, %c0_4] : memref<128x128xbf16, #tpu.memory_space<vmem>>, vector<128x128xbf16>
    %cst = arith.constant dense<0.000000e+00> : vector<32x128xf32>
    %16 = tpu.matmul %14, %15, %cst {dimension_numbers = #tpu.dot_dimension_numbers<[1], [0], [0], [1], [0, 0, 1, 1], [], []>} : vector<32x128xbf16>, vector<128x128xbf16>, vector<32x128xf32> -> vector<32x128xf32>
    %17 = vector.extract_strided_slice %0 {offsets = [0, 0], sizes = [1, 128], strides = [1, 1]} : vector<6x128xf32> to vector<1x128xf32>
    %18 = vector.extract_strided_slice %0 {offsets = [1, 0], sizes = [1, 128], strides = [1, 1]} : vector<6x128xf32> to vector<1x128xf32>
    %cst_5 = arith.constant dense<0.000000e+00> : vector<32xf32>
    %19 = vector.multi_reduction <add>, %16, %cst_5 [1] : vector<32x128xf32> to vector<32xf32>
    %20 = vector.shape_cast %19 : vector<32xf32> to vector<32x1xf32>
    %cst_6 = arith.constant 1.280000e+02 : f32
    %21 = vector.broadcast %cst_6 : f32 to vector<32x1xf32>
    %22 = arith.divf %20, %21 : vector<32x1xf32>
    %23 = vector.broadcast %22 : vector<32x1xf32> to vector<32x128xf32>
    %24 = arith.subf %16, %23 : vector<32x128xf32>
    %25 = arith.mulf %24, %24 : vector<32x128xf32>
    %cst_7 = arith.constant dense<0.000000e+00> : vector<32xf32>
    %26 = vector.multi_reduction <add>, %25, %cst_7 [1] : vector<32x128xf32> to vector<32xf32>
    %27 = vector.shape_cast %26 : vector<32xf32> to vector<32x1xf32>
    %cst_8 = arith.constant 1.280000e+02 : f32
    %28 = vector.broadcast %cst_8 : f32 to vector<32x1xf32>
    %29 = arith.divf %27, %28 : vector<32x1xf32>
    %30 = vector.broadcast %22 : vector<32x1xf32> to vector<32x128xf32>
    %31 = arith.subf %16, %30 : vector<32x128xf32>
    %cst_9 = arith.constant 9.99999996E-13 : f32
    %32 = vector.broadcast %cst_9 : f32 to vector<32x1xf32>
    %33 = arith.addf %29, %32 : vector<32x1xf32>
    %34 = math.rsqrt %33 : vector<32x1xf32>
    %35 = vector.broadcast %34 : vector<32x1xf32> to vector<32x128xf32>
    %36 = arith.mulf %31, %35 : vector<32x128xf32>
    %37 = vector.broadcast %17 : vector<1x128xf32> to vector<32x128xf32>
    %38 = arith.mulf %36, %37 : vector<32x128xf32>
    %39 = vector.broadcast %18 : vector<1x128xf32> to vector<32x128xf32>
    %40 = arith.addf %38, %39 : vector<32x128xf32>
    %41 = arith.truncf %40 : vector<32x128xf32> to vector<32x128xbf16>
    %c0_10 = arith.constant 0 : index
    %c0_11 = arith.constant 0 : index
    %42 = vector.load %arg5[%c0_10, %c0_11] : memref<128x384xbf16, #tpu.memory_space<vmem>>, vector<128x384xbf16>
    %cst_12 = arith.constant dense<0.000000e+00> : vector<32x384xf32>
    %43 = tpu.matmul %41, %42, %cst_12 {dimension_numbers = #tpu.dot_dimension_numbers<[1], [0], [0], [1], [0, 0, 1, 1], [], []>} : vector<32x128xbf16>, vector<128x384xbf16>, vector<32x384xf32> -> vector<32x384xf32>
    %c0_13 = arith.constant 0 : index
    %c0_14 = arith.constant 0 : index
    %44 = vector.load %arg6[%c0_13, %c0_14] : memref<1x384xf32, #tpu.memory_space<vmem>>, vector<1x384xf32>
    %45 = vector.broadcast %44 : vector<1x384xf32> to vector<32x384xf32>
    %46 = arith.addf %43, %45 : vector<32x384xf32>
    %c0_15 = arith.constant 0 : index
    %c0_16 = arith.constant 0 : index
    %47 = vector.load %arg2[%c0_15, %c0_16] : memref<32x32xf32, #tpu.memory_space<vmem>>, vector<32x32xf32>
    %48 = vector.extract_strided_slice %46 {offsets = [0, 0], sizes = [32, 128], strides = [1, 1]} : vector<32x384xf32> to vector<32x128xf32>
    %49 = vector.extract_strided_slice %46 {offsets = [0, 128], sizes = [32, 128], strides = [1, 1]} : vector<32x384xf32> to vector<32x128xf32>
    %50 = vector.extract_strided_slice %46 {offsets = [0, 256], sizes = [32, 128], strides = [1, 1]} : vector<32x384xf32> to vector<32x128xf32>
    %c0_17 = arith.constant 0 : index
    %c0_18 = arith.constant 0 : index
    %51 = vector.load %arg8[%c0_17, %c0_18] : memref<1x128xf32, #tpu.memory_space<vmem>>, vector<1x128xf32>
    %52 = vector.extract_strided_slice %48 {offsets = [0, 0], sizes = [32, 64], strides = [1, 1]} : vector<32x128xf32> to vector<32x64xf32>
    %53 = arith.truncf %52 : vector<32x64xf32> to vector<32x64xbf16>
    %54 = vector.extract_strided_slice %49 {offsets = [0, 0], sizes = [32, 64], strides = [1, 1]} : vector<32x128xf32> to vector<32x64xf32>
    %55 = arith.truncf %54 : vector<32x64xf32> to vector<32x64xbf16>
    %56 = vector.extract_strided_slice %50 {offsets = [0, 0], sizes = [32, 64], strides = [1, 1]} : vector<32x128xf32> to vector<32x64xf32>
    %57 = arith.truncf %56 : vector<32x64xf32> to vector<32x64xbf16>
    "tpu.trace_start"() <{level = 10 : i32, message = "qd,kd->qk"}> : () -> ()
    %cst_19 = arith.constant dense<0.000000e+00> : vector<32x32xf32>
    %58 = tpu.matmul %53, %55, %cst_19 {dimension_numbers = #tpu.dot_dimension_numbers<[1], [1], [0], [0], [0, 0, 1, 0], [], []>} : vector<32x64xbf16>, vector<32x64xbf16>, vector<32x32xf32> -> vector<32x32xf32>
    "tpu.trace_stop"() : () -> ()
    %cst_20 = arith.constant 1.250000e-01 : f32
    %59 = vector.broadcast %cst_20 : f32 to vector<32x32xf32>
    %60 = arith.mulf %58, %59 : vector<32x32xf32>
    %61 = arith.addf %60, %47 : vector<32x32xf32>
    %cst_21 = arith.constant dense<0xFF800000> : vector<32xf32>
    %62 = vector.multi_reduction <maximumf>, %61, %cst_21 [1] : vector<32x32xf32> to vector<32xf32>
    %63 = vector.shape_cast %62 : vector<32xf32> to vector<32x1xf32>
    %64 = vector.broadcast %63 : vector<32x1xf32> to vector<32x32xf32>
    %65 = arith.subf %61, %64 : vector<32x32xf32>
    %66 = math.exp %65 : vector<32x32xf32>
    %cst_22 = arith.constant dense<0.000000e+00> : vector<32xf32>
    %67 = vector.multi_reduction <add>, %66, %cst_22 [1] : vector<32x32xf32> to vector<32xf32>
    %68 = vector.shape_cast %67 : vector<32xf32> to vector<32x1xf32>
    %69 = tpu.reciprocal %68 {approx = true} : vector<32x1xf32> -> vector<32x1xf32>
    %70 = vector.broadcast %69 : vector<32x1xf32> to vector<32x32xf32>
    %71 = arith.mulf %66, %70 : vector<32x32xf32>
    %72 = arith.truncf %71 : vector<32x32xf32> to vector<32x32xbf16>
    %cst_23 = arith.constant dense<0.000000e+00> : vector<32x64xf32>
    %73 = tpu.matmul %72, %57, %cst_23 {dimension_numbers = #tpu.dot_dimension_numbers<[1], [0], [0], [1], [0, 0, 1, 1], [], []>} : vector<32x32xbf16>, vector<32x64xbf16>, vector<32x64xf32> -> vector<32x64xf32>
    %74 = arith.truncf %73 : vector<32x64xf32> to vector<32x64xbf16>
    %c0_24 = arith.constant 0 : index
    %c0_25 = arith.constant 0 : index
    %75 = vector.load %arg7[%c0_24, %c0_25] : memref<128x128xbf16, #tpu.memory_space<vmem>>, vector<64x128xbf16>
    %cst_26 = arith.constant dense<0.000000e+00> : vector<32x128xf32>
    %76 = tpu.matmul %74, %75, %cst_26 {dimension_numbers = #tpu.dot_dimension_numbers<[1], [0], [0], [1], [0, 0, 1, 1], [], []>} : vector<32x64xbf16>, vector<64x128xbf16>, vector<32x128xf32> -> vector<32x128xf32>
    %77 = vector.broadcast %51 : vector<1x128xf32> to vector<32x128xf32>
    %78 = arith.addf %77, %76 : vector<32x128xf32>
    %79 = vector.extract_strided_slice %48 {offsets = [0, 64], sizes = [32, 64], strides = [1, 1]} : vector<32x128xf32> to vector<32x64xf32>
    %80 = arith.truncf %79 : vector<32x64xf32> to vector<32x64xbf16>
    %81 = vector.extract_strided_slice %49 {offsets = [0, 64], sizes = [32, 64], strides = [1, 1]} : vector<32x128xf32> to vector<32x64xf32>
    %82 = arith.truncf %81 : vector<32x64xf32> to vector<32x64xbf16>
    %83 = vector.extract_strided_slice %50 {offsets = [0, 64], sizes = [32, 64], strides = [1, 1]} : vector<32x128xf32> to vector<32x64xf32>
    %84 = arith.truncf %83 : vector<32x64xf32> to vector<32x64xbf16>
    "tpu.trace_start"() <{level = 10 : i32, message = "qd,kd->qk"}> : () -> ()
    %cst_27 = arith.constant dense<0.000000e+00> : vector<32x32xf32>
    %85 = tpu.matmul %80, %82, %cst_27 {dimension_numbers = #tpu.dot_dimension_numbers<[1], [1], [0], [0], [0, 0, 1, 0], [], []>} : vector<32x64xbf16>, vector<32x64xbf16>, vector<32x32xf32> -> vector<32x32xf32>
    "tpu.trace_stop"() : () -> ()
    %cst_28 = arith.constant 1.250000e-01 : f32
    %86 = vector.broadcast %cst_28 : f32 to vector<32x32xf32>
    %87 = arith.mulf %85, %86 : vector<32x32xf32>
    %88 = arith.addf %87, %47 : vector<32x32xf32>
    %cst_29 = arith.constant dense<0xFF800000> : vector<32xf32>
    %89 = vector.multi_reduction <maximumf>, %88, %cst_29 [1] : vector<32x32xf32> to vector<32xf32>
    %90 = vector.shape_cast %89 : vector<32xf32> to vector<32x1xf32>
    %91 = vector.broadcast %90 : vector<32x1xf32> to vector<32x32xf32>
    %92 = arith.subf %88, %91 : vector<32x32xf32>
    %93 = math.exp %92 : vector<32x32xf32>
    %cst_30 = arith.constant dense<0.000000e+00> : vector<32xf32>
    %94 = vector.multi_reduction <add>, %93, %cst_30 [1] : vector<32x32xf32> to vector<32xf32>
    %95 = vector.shape_cast %94 : vector<32xf32> to vector<32x1xf32>
    %96 = tpu.reciprocal %95 {approx = true} : vector<32x1xf32> -> vector<32x1xf32>
    %97 = vector.broadcast %96 : vector<32x1xf32> to vector<32x32xf32>
    %98 = arith.mulf %93, %97 : vector<32x32xf32>
    %99 = arith.truncf %98 : vector<32x32xf32> to vector<32x32xbf16>
    %cst_31 = arith.constant dense<0.000000e+00> : vector<32x64xf32>
    %100 = tpu.matmul %99, %84, %cst_31 {dimension_numbers = #tpu.dot_dimension_numbers<[1], [0], [0], [1], [0, 0, 1, 1], [], []>} : vector<32x32xbf16>, vector<32x64xbf16>, vector<32x64xf32> -> vector<32x64xf32>
    %101 = arith.truncf %100 : vector<32x64xf32> to vector<32x64xbf16>
    %c64 = arith.constant 64 : index
    %c0_32 = arith.constant 0 : index
    %102 = vector.load %arg7[%c64, %c0_32] : memref<128x128xbf16, #tpu.memory_space<vmem>>, vector<64x128xbf16>
    %cst_33 = arith.constant dense<0.000000e+00> : vector<32x128xf32>
    %103 = tpu.matmul %101, %102, %cst_33 {dimension_numbers = #tpu.dot_dimension_numbers<[1], [0], [0], [1], [0, 0, 1, 1], [], []>} : vector<32x64xbf16>, vector<64x128xbf16>, vector<32x128xf32> -> vector<32x128xf32>
    %104 = arith.addf %78, %103 : vector<32x128xf32>
    %105 = arith.addf %40, %104 : vector<32x128xf32>
    %106 = vector.extract_strided_slice %0 {offsets = [2, 0], sizes = [1, 128], strides = [1, 1]} : vector<6x128xf32> to vector<1x128xf32>
    %107 = vector.extract_strided_slice %0 {offsets = [3, 0], sizes = [1, 128], strides = [1, 1]} : vector<6x128xf32> to vector<1x128xf32>
    %cst_34 = arith.constant dense<0.000000e+00> : vector<32xf32>
    %108 = vector.multi_reduction <add>, %105, %cst_34 [1] : vector<32x128xf32> to vector<32xf32>
    %109 = vector.shape_cast %108 : vector<32xf32> to vector<32x1xf32>
    %cst_35 = arith.constant 1.280000e+02 : f32
    %110 = vector.broadcast %cst_35 : f32 to vector<32x1xf32>
    %111 = arith.divf %109, %110 : vector<32x1xf32>
    %112 = vector.broadcast %111 : vector<32x1xf32> to vector<32x128xf32>
    %113 = arith.subf %105, %112 : vector<32x128xf32>
    %114 = arith.mulf %113, %113 : vector<32x128xf32>
    %cst_36 = arith.constant dense<0.000000e+00> : vector<32xf32>
    %115 = vector.multi_reduction <add>, %114, %cst_36 [1] : vector<32x128xf32> to vector<32xf32>
    %116 = vector.shape_cast %115 : vector<32xf32> to vector<32x1xf32>
    %cst_37 = arith.constant 1.280000e+02 : f32
    %117 = vector.broadcast %cst_37 : f32 to vector<32x1xf32>
    %118 = arith.divf %116, %117 : vector<32x1xf32>
    %119 = vector.broadcast %111 : vector<32x1xf32> to vector<32x128xf32>
    %120 = arith.subf %105, %119 : vector<32x128xf32>
    %cst_38 = arith.constant 9.99999996E-13 : f32
    %121 = vector.broadcast %cst_38 : f32 to vector<32x1xf32>
    %122 = arith.addf %118, %121 : vector<32x1xf32>
    %123 = math.rsqrt %122 : vector<32x1xf32>
    %124 = vector.broadcast %123 : vector<32x1xf32> to vector<32x128xf32>
    %125 = arith.mulf %120, %124 : vector<32x128xf32>
    %126 = vector.broadcast %106 : vector<1x128xf32> to vector<32x128xf32>
    %127 = arith.mulf %125, %126 : vector<32x128xf32>
    %128 = vector.broadcast %107 : vector<1x128xf32> to vector<32x128xf32>
    %129 = arith.addf %127, %128 : vector<32x128xf32>
    %130 = arith.truncf %129 : vector<32x128xf32> to vector<32x128xbf16>
    %c0_39 = arith.constant 0 : index
    %c0_40 = arith.constant 0 : index
    %131 = vector.load %arg9[%c0_39, %c0_40] : memref<128x512xbf16, #tpu.memory_space<vmem>>, vector<128x512xbf16>
    %cst_41 = arith.constant dense<0.000000e+00> : vector<32x512xf32>
    %132 = tpu.matmul %130, %131, %cst_41 {dimension_numbers = #tpu.dot_dimension_numbers<[1], [0], [0], [1], [0, 0, 1, 1], [], []>} : vector<32x128xbf16>, vector<128x512xbf16>, vector<32x512xf32> -> vector<32x512xf32>
    %c0_42 = arith.constant 0 : index
    %c0_43 = arith.constant 0 : index
    %133 = vector.load %arg10[%c0_42, %c0_43] : memref<1x512xf32, #tpu.memory_space<vmem>>, vector<1x512xf32>
    %134 = vector.broadcast %133 : vector<1x512xf32> to vector<32x512xf32>
    %135 = arith.addf %132, %134 : vector<32x512xf32>
    %136 = arith.mulf %135, %135 : vector<32x512xf32>
    %137 = arith.mulf %135, %136 : vector<32x512xf32>
    %cst_44 = arith.constant 4.471500e-02 : f32
    %138 = vector.broadcast %cst_44 : f32 to vector<32x512xf32>
    %139 = arith.mulf %138, %137 : vector<32x512xf32>
    %140 = arith.addf %135, %139 : vector<32x512xf32>
    %cst_45 = arith.constant 0.797884583 : f32
    %141 = vector.broadcast %cst_45 : f32 to vector<32x512xf32>
    %142 = arith.mulf %141, %140 : vector<32x512xf32>
    %143 = math.tanh %142 : vector<32x512xf32>
    %cst_46 = arith.constant 1.000000e+00 : f32
    %144 = vector.broadcast %cst_46 : f32 to vector<32x512xf32>
    %145 = arith.addf %144, %143 : vector<32x512xf32>
    %cst_47 = arith.constant 5.000000e-01 : f32
    %146 = vector.broadcast %cst_47 : f32 to vector<32x512xf32>
    %147 = arith.mulf %146, %145 : vector<32x512xf32>
    %148 = arith.mulf %135, %147 : vector<32x512xf32>
    %149 = arith.truncf %148 : vector<32x512xf32> to vector<32x512xbf16>
    %c0_48 = arith.constant 0 : index
    %c0_49 = arith.constant 0 : index
    %150 = vector.load %arg11[%c0_48, %c0_49] : memref<512x128xbf16, #tpu.memory_space<vmem>>, vector<512x128xbf16>
    %cst_50 = arith.constant dense<0.000000e+00> : vector<32x128xf32>
    %151 = tpu.matmul %149, %150, %cst_50 {dimension_numbers = #tpu.dot_dimension_numbers<[1], [0], [0], [1], [0, 0, 1, 1], [], []>} : vector<32x512xbf16>, vector<512x128xbf16>, vector<32x128xf32> -> vector<32x128xf32>
    %c0_51 = arith.constant 0 : index
    %c0_52 = arith.constant 0 : index
    %152 = vector.load %arg12[%c0_51, %c0_52] : memref<1x128xf32, #tpu.memory_space<vmem>>, vector<1x128xf32>
    %153 = vector.broadcast %152 : vector<1x128xf32> to vector<32x128xf32>
    %154 = arith.addf %151, %153 : vector<32x128xf32>
    %155 = arith.addf %129, %154 : vector<32x128xf32>
    %156 = vector.extract_strided_slice %0 {offsets = [4, 0], sizes = [1, 128], strides = [1, 1]} : vector<6x128xf32> to vector<1x128xf32>
    %157 = vector.extract_strided_slice %0 {offsets = [5, 0], sizes = [1, 128], strides = [1, 1]} : vector<6x128xf32> to vector<1x128xf32>
    %cst_53 = arith.constant dense<0.000000e+00> : vector<32xf32>
    %158 = vector.multi_reduction <add>, %155, %cst_53 [1] : vector<32x128xf32> to vector<32xf32>
    %159 = vector.shape_cast %158 : vector<32xf32> to vector<32x1xf32>
    %cst_54 = arith.constant 1.280000e+02 : f32
    %160 = vector.broadcast %cst_54 : f32 to vector<32x1xf32>
    %161 = arith.divf %159, %160 : vector<32x1xf32>
    %162 = vector.broadcast %161 : vector<32x1xf32> to vector<32x128xf32>
    %163 = arith.subf %155, %162 : vector<32x128xf32>
    %164 = arith.mulf %163, %163 : vector<32x128xf32>
    %cst_55 = arith.constant dense<0.000000e+00> : vector<32xf32>
    %165 = vector.multi_reduction <add>, %164, %cst_55 [1] : vector<32x128xf32> to vector<32xf32>
    %166 = vector.shape_cast %165 : vector<32xf32> to vector<32x1xf32>
    %cst_56 = arith.constant 1.280000e+02 : f32
    %167 = vector.broadcast %cst_56 : f32 to vector<32x1xf32>
    %168 = arith.divf %166, %167 : vector<32x1xf32>
    %169 = vector.broadcast %161 : vector<32x1xf32> to vector<32x128xf32>
    %170 = arith.subf %155, %169 : vector<32x128xf32>
    %cst_57 = arith.constant 9.99999996E-13 : f32
    %171 = vector.broadcast %cst_57 : f32 to vector<32x1xf32>
    %172 = arith.addf %168, %171 : vector<32x1xf32>
    %173 = math.rsqrt %172 : vector<32x1xf32>
    %174 = vector.broadcast %173 : vector<32x1xf32> to vector<32x128xf32>
    %175 = arith.mulf %170, %174 : vector<32x128xf32>
    %176 = vector.broadcast %156 : vector<1x128xf32> to vector<32x128xf32>
    %177 = arith.mulf %175, %176 : vector<32x128xf32>
    %178 = vector.broadcast %157 : vector<1x128xf32> to vector<32x128xf32>
    %179 = arith.addf %177, %178 : vector<32x128xf32>
    %180 = arith.truncf %179 : vector<32x128xf32> to vector<32x128xbf16>
    %c0_58 = arith.constant 0 : index
    %c0_59 = arith.constant 0 : index
    %181 = vector.load %arg14[%c0_58, %c0_59] : memref<128x256xbf16, #tpu.memory_space<vmem>>, vector<128x256xbf16>
    %cst_60 = arith.constant dense<0.000000e+00> : vector<32x256xf32>
    %182 = tpu.matmul %180, %181, %cst_60 {dimension_numbers = #tpu.dot_dimension_numbers<[1], [0], [0], [1], [0, 0, 1, 1], [], []>} : vector<32x128xbf16>, vector<128x256xbf16>, vector<32x256xf32> -> vector<32x256xf32>
    %c0_61 = arith.constant 0 : index
    %c0_62 = arith.constant 0 : index
    %183 = vector.load %arg15[%c0_61, %c0_62] : memref<1x256xf32, #tpu.memory_space<vmem>>, vector<1x256xf32>
    %184 = vector.broadcast %183 : vector<1x256xf32> to vector<32x256xf32>
    %185 = arith.addf %182, %184 : vector<32x256xf32>
    %c0_63 = arith.constant 0 : index
    %c0_64 = arith.constant 0 : index
    %186 = vector.load %arg16[%c0_63, %c0_64] : memref<32x256xf32, #tpu.memory_space<vmem>>, vector<32x256xf32>
    tpu.vector_store %arg16[%c0_63, %c0_64], %185 {strides = array<i32>} : memref<32x256xf32, #tpu.memory_space<vmem>>, vector<32x256xf32>,
    %c0_65 = arith.constant 0 : index
    %c0_66 = arith.constant 0 : index
    %187 = vector.load %arg1[%c0_65, %c0_66] : memref<4x8xi32, #tpu.memory_space<vmem>>, vector<4x8xi32>
    %188 = tpu.iota {dimensions = array<i32: 2>} : vector<4x8x128xi32>
    %189 = vector.shape_cast %187 : vector<4x8xi32> to vector<4x8x1xi32>
    %190 = vector.broadcast %189 : vector<4x8x1xi32> to vector<4x8x128xi32>
    %191 = arith.cmpi eq, %188, %190 : vector<4x8x128xi32>
    %192 = arith.extui %191 : vector<4x8x128xi1> to vector<4x8x128xi32>
    %193 = arith.sitofp %192 : vector<4x8x128xi32> to vector<4x8x128xf32>
    %194 = vector.shape_cast %193 : vector<4x8x128xf32> to vector<32x128xf32>
    %c0_67 = arith.constant 0 : index
    %c0_68 = arith.constant 0 : index
    %195 = vector.load %arg3[%c0_67, %c0_68] : memref<32x2xf32, #tpu.memory_space<vmem>>, vector<32x2xf32>
    %196 = vector.extract_strided_slice %185 {offsets = [0, 0], sizes = [32, 128], strides = [1, 1]} : vector<32x256xf32> to vector<32x128xf32>
    %197 = vector.extract_strided_slice %195 {offsets = [0, 0], sizes = [32, 1], strides = [1, 1]} : vector<32x2xf32> to vector<32x1xf32>
    %cst_69 = arith.constant dense<0xFF800000> : vector<32xf32>
    %198 = vector.multi_reduction <maximumf>, %196, %cst_69 [1] : vector<32x128xf32> to vector<32xf32>
    %199 = vector.shape_cast %198 : vector<32xf32> to vector<32x1xf32>
    %200 = vector.broadcast %199 : vector<32x1xf32> to vector<32x128xf32>
    %201 = arith.subf %196, %200 : vector<32x128xf32>
    %202 = math.exp %201 : vector<32x128xf32>
    %cst_70 = arith.constant dense<0.000000e+00> : vector<32xf32>
    %203 = vector.multi_reduction <add>, %202, %cst_70 [1] : vector<32x128xf32> to vector<32xf32>
    %204 = vector.shape_cast %203 : vector<32xf32> to vector<32x1xf32>
    %205 = math.log %204 : vector<32x1xf32>
    %206 = arith.addf %199, %205 : vector<32x1xf32>
    %207 = arith.mulf %196, %194 : vector<32x128xf32>
    %cst_71 = arith.constant dense<0.000000e+00> : vector<32xf32>
    %208 = vector.multi_reduction <add>, %207, %cst_71 [1] : vector<32x128xf32> to vector<32xf32>
    %209 = vector.shape_cast %208 : vector<32xf32> to vector<32x1xf32>
    %210 = arith.subf %206, %209 : vector<32x1xf32>
    %211 = arith.mulf %210, %197 : vector<32x1xf32>
    %212 = vector.shape_cast %197 : vector<32x1xf32> to vector<1x32x1xf32>
    %cst_72 = arith.constant dense<0.000000e+00> : vector<1xf32>
    %213 = vector.multi_reduction <add>, %212, %cst_72 [1, 2] : vector<1x32x1xf32> to vector<1xf32>
    %214 = vector.shape_cast %213 : vector<1xf32> to vector<1x1x1xf32>
    %215 = vector.extract %214[0, 0, 0] : f32 from vector<1x1x1xf32>
    %cst_73 = arith.constant 1.000000e+00 : f32
    %216 = arith.maximumf %215, %cst_73 : f32
    %217 = vector.shape_cast %211 : vector<32x1xf32> to vector<1x32x1xf32>
    %cst_74 = arith.constant dense<0.000000e+00> : vector<1xf32>
    %218 = vector.multi_reduction <add>, %217, %cst_74 [1, 2] : vector<1x32x1xf32> to vector<1xf32>
    %219 = vector.shape_cast %218 : vector<1xf32> to vector<1x1x1xf32>
    %220 = vector.extract %219[0, 0, 0] : f32 from vector<1x1x1xf32>
    %221 = arith.divf %220, %216 : f32
    %c0_75 = arith.constant 0 : index
    %c0_76 = arith.constant 0 : index
    %222 = memref.load %arg17[%c0_75, %c0_76] : memref<1x2xf32, #tpu.memory_space<smem>>
    memref.store %221, %arg17[%c0_75, %c0_76] : memref<1x2xf32, #tpu.memory_space<smem>>
    %223 = vector.extract_strided_slice %185 {offsets = [0, 128], sizes = [32, 128], strides = [1, 1]} : vector<32x256xf32> to vector<32x128xf32>
    %224 = vector.extract_strided_slice %195 {offsets = [0, 1], sizes = [32, 1], strides = [1, 1]} : vector<32x2xf32> to vector<32x1xf32>
    %cst_77 = arith.constant dense<0xFF800000> : vector<32xf32>
    %225 = vector.multi_reduction <maximumf>, %223, %cst_77 [1] : vector<32x128xf32> to vector<32xf32>
    %226 = vector.shape_cast %225 : vector<32xf32> to vector<32x1xf32>
    %227 = vector.broadcast %226 : vector<32x1xf32> to vector<32x128xf32>
    %228 = arith.subf %223, %227 : vector<32x128xf32>
    %229 = math.exp %228 : vector<32x128xf32>
    %cst_78 = arith.constant dense<0.000000e+00> : vector<32xf32>
    %230 = vector.multi_reduction <add>, %229, %cst_78 [1] : vector<32x128xf32> to vector<32xf32>
    %231 = vector.shape_cast %230 : vector<32xf32> to vector<32x1xf32>
    %232 = math.log %231 : vector<32x1xf32>
    %233 = arith.addf %226, %232 : vector<32x1xf32>
    %234 = arith.mulf %223, %194 : vector<32x128xf32>
    %cst_79 = arith.constant dense<0.000000e+00> : vector<32xf32>
    %235 = vector.multi_reduction <add>, %234, %cst_79 [1] : vector<32x128xf32> to vector<32xf32>
    %236 = vector.shape_cast %235 : vector<32xf32> to vector<32x1xf32>
    %237 = arith.subf %233, %236 : vector<32x1xf32>
    %238 = arith.mulf %237, %224 : vector<32x1xf32>
    %239 = vector.shape_cast %224 : vector<32x1xf32> to vector<1x32x1xf32>
    %cst_80 = arith.constant dense<0.000000e+00> : vector<1xf32>
    %240 = vector.multi_reduction <add>, %239, %cst_80 [1, 2] : vector<1x32x1xf32> to vector<1xf32>
    %241 = vector.shape_cast %240 : vector<1xf32> to vector<1x1x1xf32>
    %242 = vector.extract %241[0, 0, 0] : f32 from vector<1x1x1xf32>
    %cst_81 = arith.constant 1.000000e+00 : f32
    %243 = arith.maximumf %242, %cst_81 : f32
    %244 = vector.shape_cast %238 : vector<32x1xf32> to vector<1x32x1xf32>
    %cst_82 = arith.constant dense<0.000000e+00> : vector<1xf32>
    %245 = vector.multi_reduction <add>, %244, %cst_82 [1, 2] : vector<1x32x1xf32> to vector<1xf32>
    %246 = vector.shape_cast %245 : vector<1xf32> to vector<1x1x1xf32>
    %247 = vector.extract %246[0, 0, 0] : f32 from vector<1x1x1xf32>
    %248 = arith.divf %247, %243 : f32
    %c0_83 = arith.constant 0 : index
    %c1 = arith.constant 1 : index
    %249 = memref.load %arg17[%c0_83, %c1] : memref<1x2xf32, #tpu.memory_space<smem>>
    memref.store %248, %arg17[%c0_83, %c1] : memref<1x2xf32, #tpu.memory_space<smem>>
    return
  }
}

</mosaic_0001>

<bundles_post_ra>
// kernel: eq.14
= control target key start
LH: loop header
LB: loop body
LE: loop exit
PB: predicated region body
PF: predicated region fallthrough
CT: control target
= control target key end

     0   :  { %vm7_vm0 = vcmask 64512   ;;  %s37_s8 = smov 8   ;;  %s38_s9 = smov 16   ;;  %vm13_vm1 = vcmask 261312   ;;  %vm19_vm2 = vcmask 195712   ;;  %vm25_vm3 = vcmask 130112   ;;  %s55_s0 = inlined_call_operand.vmem [shape: s32[4,8], index: 0, kind: input, shape index: {}]   ;;  %s56_s1 = inlined_call_operand.vmem [shape: s32[32], index: 1, kind: output, shape index: {}]  }
   0x1   :  { %v4_v0 = vld [vmem:[%s55_s0] sm:$0xf]  ;;  %s36_s0 = smov 24  }
   0x2   :  { %5 = vst [vmem:[#allocation1] sm:$0xf] %v4_v0 }
   0x9   :  { %v10_v1 = vld [vmem:[#allocation1 + $0x3] sm:$0x1]   ;;  %v22_v2 = vld [vmem:[#allocation1 + $0x1] sm:$0x1]   ;;  %v6_v3 = vld [vmem:[#allocation1] sm:$0x1]  }
   0xa   :  { %11 = vrot.lane.b32.xlu0 %v10_v1, %s36_s0  ;;  %23 = vrot.lane.b32.xlu1 %v22_v2, %s37_s8  ;;  %v16_v4 = vld [vmem:[#allocation1 + $0x2] sm:$0x1]   ;;  %8 = vst.msk [vmem:[#allocation0] sm:$0x1] %vm7_vm0, %v6_v3  }
   0xe   :  { %17 = vrot.lane.b32.xlu0 %v16_v4, %s38_s9 }
  0x7c   :  { %v12_v5 = vpop.permute.xlu0 %11   ;;  %v24_v6 = vpop.permute.xlu1 %23  }
  0x7d   :  { %14 = vst.msk [vmem:[#allocation0] sm:$0x1] %vm13_vm1, %v12_v5  }
  0x80   :  { %v18_v7 = vpop.permute.xlu0 %17  }
  0x81   :  { %20 = vst.msk [vmem:[#allocation0] sm:$0x1] %vm19_vm2, %v18_v7  }
  0x82   :  { %26 = vst.msk [vmem:[#allocation0] sm:$0x1] %vm25_vm3, %v24_v6  }
  0x89   :  { %v30_v8 = vld [vmem:[#allocation0] sm:$0x1] }
  0x8a   :  { %32 = vst [vmem:[%s56_s1] sm:$0x1] %v30_v8 }

// kernel: _forward_device_impl.1
= control target key start
LH: loop header
LB: loop body
LE: loop exit
PB: predicated region body
PF: predicated region fallthrough
CT: control target
= control target key end

     0   :  { %s4238_s0 = inlined_call_operand.vmem [shape: s32[4,8], index: 0, kind: input, shape index: {}]   ;;  %s4239_s1 = inlined_call_operand.vmem [shape: s32[4,8], index: 1, kind: input, shape index: {}]   ;;  %s4240_s2 = inlined_call_operand.vmem [shape: f32[32,32], index: 2, kind: input, shape index: {}]   ;;  %s4241_s3 = inlined_call_operand.vmem [shape: f32[32,2], index: 3, kind: input, shape index: {}]   ;;  %s4242_s4 = inlined_call_operand.hbm [shape: bf16[128,128], index: 4, kind: input, shape index: {}]   ;;  %s4243_s5 = inlined_call_operand.hbm [shape: bf16[128,384], index: 5, kind: input, shape index: {}]   ;;  %s4244_s6 = inlined_call_operand.vmem [shape: f32[1,384], index: 6, kind: input, shape index: {}]   ;;  %s4245_s7 = inlined_call_operand.hbm [shape: bf16[128,128], index: 7, kind: input, shape index: {}]   ;;  %s4246_s8 = inlined_call_operand.vmem [shape: f32[1,128], index: 8, kind: input, shape index: {}]   ;;  %s4247_s9 = inlined_call_operand.hbm [shape: bf16[128,512], index: 9, kind: input, shape index: {}]   ;;  %s4248_s10 = inlined_call_operand.vmem [shape: f32[1,512], index: 10, kind: input, shape index: {}]   ;;  %s4249_s11 = inlined_call_operand.hbm [shape: bf16[512,128], index: 11, kind: input, shape index: {}]   ;;  %s4250_s12 = inlined_call_operand.vmem [shape: f32[1,128], index: 12, kind: input, shape index: {}]   ;;  %s4251_s13 = inlined_call_operand.vmem [shape: f32[6,128], index: 13, kind: input, shape index: {}]   ;;  %s4252_s14 = inlined_call_operand.vmem [shape: bf16[128,256], index: 14, kind: input, shape index: {}]   ;;  %s4253_s15 = inlined_call_operand.vmem [shape: f32[1,256], index: 15, kind: input, shape index: {}]   ;;  %s4254_s16 = inlined_call_operand.hbm [shape: f32[32,256], index: 16, kind: output, shape index: {0}]   ;;  %s4255_s17 = inlined_call_operand.vmem [shape: f32[1,2], index: 17, kind: output, shape index: {1}]  }
   0x1   :  { %4257 = sst [smem:[#allocation19_spill]] %s4238_s0 }
   0x2   :  { %4258 = sst [smem:[#allocation20_spill]] %s4239_s1 }
   0x3   :  { %23 = vsyncpa [#allocation3], 0 }
   0x4   :  { %24 = vsyncpa [#allocation7], 0 }
   0x5   :  { %25 = vsyncpa [#allocation10], 0 }
   0x6   :  { %26 = vsyncpa [#allocation4], 0 }
   0x7   :  { %27 = vsyncpa [#allocation5], 0  ;;  %s3463_s24 = smov [#allocation6]   ;;  %s3309_s28 = scalar_lea.hbm %s4243_s5, 3072 }
   0x8   :  { %s53_s25 = sshll.u32 %s3463_s24, 4  ;;  %p3310_p0 = scmp.ne.s32.totalorder %s4243_s5, %s3309_s28  ;;  %s54_s25 = int_to_ptr.vmem [resolvable:$true] %s53_s25 }
   0x9   :  { %p3313_p1 = scmp.lt.u32.totalorder %s3309_s28, %s4243_s5 }
   0xb   :  { %p3315_p2 = pnand %p3313_p1, %p3310_p0 }
   0xd   :  { %3318 = shalt.err (!%p3315_p2)
}
   0xe   :  { %s3319_s19 = scalar_lea.vmem %s54_s25, 3072  ;;  %p3324_p4 = scmp.lt.s32.totalorder %s54_s25, %s54_s25 }
   0xf   :  { %p3320_p3 = scmp.ne.s32.totalorder %s54_s25, %s3319_s19  ;;  %p3325_p5 = scmp.lt.s32.totalorder %s3319_s19, %s3319_s19 }
  0x11   :  { %p3326_p6 = por %p3325_p5, %p3324_p4 }
  0x13   :  { %p3327_p7 = pnand %p3326_p6, %p3320_p3 }
  0x15   :  { %3330 = shalt.err (!%p3327_p7)
}
  0x16   :  { %s3464_s1 = smov 192   ;;  %s3465_s20 = smov 12  }
  0x17   :  { %59 = dma.hbm_to_vmem [thread:$0]  %s4243_s5, 3072, %s54_s25, [#allocation7], %s3464_s1, %s3464_s1, %s3465_s20  }
  0x18   :  { %s3466_s23 = smov [#allocation9]   ;;  %s3331_s28 = scalar_lea.hbm %s4247_s9, 4096 }
  0x19   :  { %s81_s24 = sshll.u32 %s3466_s23, 4  ;;  %p3332_p8 = scmp.ne.s32.totalorder %s4247_s9, %s3331_s28  ;;  %s82_s24 = int_to_ptr.vmem [resolvable:$true] %s81_s24 }
  0x1a   :  { %p3335_p9 = scmp.lt.u32.totalorder %s3331_s28, %s4247_s9 }
  0x1c   :  { %p3337_p10 = pnand %p3335_p9, %p3332_p8 }
  0x1e   :  { %3340 = shalt.err (!%p3337_p10)
}
  0x1f   :  { %s3341_s19 = scalar_lea.vmem %s82_s24, 4096  ;;  %p3346_p12 = scmp.lt.s32.totalorder %s82_s24, %s82_s24 }
  0x20   :  { %p3342_p11 = scmp.ne.s32.totalorder %s82_s24, %s3341_s19  ;;  %p3347_p13 = scmp.lt.s32.totalorder %s3341_s19, %s3341_s19 }
  0x22   :  { %p3348_p0 = por %p3347_p13, %p3346_p12 }
  0x24   :  { %p3349_p1 = pnand %p3348_p0, %p3342_p11 }
  0x26   :  { %3352 = shalt.err (!%p3349_p1)
}
  0x27   :  { %s4256_s5 = smov 256   ;;  %s3468_s25 = smov 16  }
  0x28   :  { %87 = dma.hbm_to_vmem [thread:$0]  %s4247_s9, 4096, %s82_s24, [#allocation10], %s4256_s5, %s4256_s5, %s3468_s25  }
  0x29   :  { %s3469_s21 = smov [#allocation2]   ;;  %s3353_s27 = scalar_lea.hbm %s4242_s4, 1024 }
  0x2a   :  { %s41_s22 = sshll.u32 %s3469_s21, 4  ;;  %p3354_p2 = scmp.ne.s32.totalorder %s4242_s4, %s3353_s27  ;;  %s42_s22 = int_to_ptr.vmem [resolvable:$true] %s41_s22 }
  0x2b   :  { %p3357_p3 = scmp.lt.u32.totalorder %s3353_s27, %s4242_s4 }
  0x2d   :  { %p3359_p4 = pnand %p3357_p3, %p3354_p2 }
  0x2f   :  { %3362 = shalt.err (!%p3359_p4)
}
  0x30   :  { %s3363_s18 = scalar_lea.vmem %s42_s22, 1024  ;;  %p3368_p6 = scmp.lt.s32.totalorder %s42_s22, %s42_s22 }
  0x31   :  { %p3364_p5 = scmp.ne.s32.totalorder %s42_s22, %s3363_s18  ;;  %p3369_p7 = scmp.lt.s32.totalorder %s3363_s18, %s3363_s18 }
  0x33   :  { %p3370_p8 = por %p3369_p7, %p3368_p6 }
  0x35   :  { %p3371_p9 = pnand %p3370_p8, %p3364_p5 }
  0x37   :  { %3374 = shalt.err (!%p3371_p9)
}
  0x38   :  { %s3470_s9 = smov 64   ;;  %s3471_s24 = smov 4  }
  0x39   :  { %47 = dma.hbm_to_vmem [thread:$0]  %s4242_s4, 1024, %s42_s22, [#allocation3], %s3470_s9, %s3470_s9, %s3471_s24  }
  0x3a   :  { %s3472_s20 = smov [#allocation8]   ;;  %s3473_s23 = smov [#allocation11]  }
  0x3b   :  { %s67_s21 = sshll.u32 %s3472_s20, 4  ;;  %s95_s26 = sshll.u32 %s3473_s23, 4  ;;  %s68_s21 = int_to_ptr.vmem [resolvable:$true] %s67_s21  ;;  %s96_s26 = int_to_ptr.vmem [resolvable:$true] %s95_s26 }
  0x3c   :  { %s3375_s29 = scalar_lea.hbm %s4245_s7, 1024 }
  0x3d   :  { %p3376_p10 = scmp.ne.s32.totalorder %s4245_s7, %s3375_s29  ;;  %p3379_p11 = scmp.lt.u32.totalorder %s3375_s29, %s4245_s7 }
  0x3f   :  { %p3381_p12 = pnand %p3379_p11, %p3376_p10 }
  0x41   :  { %3384 = shalt.err (!%p3381_p12)
}
  0x42   :  { %s3385_s4 = scalar_lea.vmem %s68_s21, 1024  ;;  %p3390_p0 = scmp.lt.s32.totalorder %s68_s21, %s68_s21 }
  0x43   :  { %p3386_p13 = scmp.ne.s32.totalorder %s68_s21, %s3385_s4  ;;  %p3391_p1 = scmp.lt.s32.totalorder %s3385_s4, %s3385_s4 }
  0x45   :  { %p3392_p2 = por %p3391_p1, %p3390_p0 }
  0x47   :  { %p3393_p3 = pnand %p3392_p2, %p3386_p13 }
  0x49   :  { %3396 = shalt.err (!%p3393_p3)
}
  0x4a   :  { %73 = dma.hbm_to_vmem [thread:$0]  %s4245_s7, 1024, %s68_s21, [#allocation7], %s3470_s9, %s3470_s9, %s3471_s24  }
  0x4b   :  { %s3397_s20 = scalar_lea.hbm %s4249_s11, 4096 }
  0x4c   :  { %p3398_p4 = scmp.ne.s32.totalorder %s4249_s11, %s3397_s20  ;;  %p3401_p5 = scmp.lt.u32.totalorder %s3397_s20, %s4249_s11 }
  0x4e   :  { %p3403_p6 = pnand %p3401_p5, %p3398_p4 }
  0x50   :  { %3406 = shalt.err (!%p3403_p6)
}
  0x51   :  { %s3407_s0 = scalar_lea.vmem %s96_s26, 4096  ;;  %p3412_p8 = scmp.lt.s32.totalorder %s96_s26, %s96_s26 }
  0x52   :  { %p3408_p7 = scmp.ne.s32.totalorder %s96_s26, %s3407_s0  ;;  %p3413_p9 = scmp.lt.s32.totalorder %s3407_s0, %s3407_s0 }
  0x54   :  { %p3414_p10 = por %p3413_p9, %p3412_p8 }
  0x56   :  { %p3415_p11 = pnand %p3414_p10, %p3408_p7 }
  0x58   :  { %3418 = shalt.err (!%p3415_p11)
}
  0x59   :  { %101 = dma.hbm_to_vmem [thread:$0]  %s4249_s11, 4096, %s96_s26, [#allocation10], %s3470_s9, %s3470_s9, %s3471_s24  }
  0x5a   :  { %3453 = dma.done.wait [#allocation3], 1024  }
  0x5b   :  { %3454 = vsyncadd [#allocation3], 4294966272 }
  0x5c   :  { %3455 = dma.done.wait [#allocation7], 4096  }
  0x5d   :  { %3456 = vsyncadd [#allocation7], 4294963200 }
  0x5e   :  { %3457 = dma.done.wait [#allocation10], 8192  }
  0x5f   :  { %3458 = vsyncadd [#allocation10], 4294959104  ;;  %v128_v0 = vlaneseq  ;;  %s4259_s26 = sld [smem:[#allocation19_spill]]  ;;  %v3032_v9 = vld [vmem:[#allocation2] sm:$0xff]   ;;  %v3033_v10 = vld [vmem:[#allocation2 + $0x8] sm:$0xff]   ;;  %vm646_vm11 = vcmask 523264  }
  0x60   :  { %2894 = vmatprep.subr.bf16.mxu0 %v3032_v9  ;;  %v3034_v13 = vld [vmem:[#allocation2 + $0x10] sm:$0xff]   ;;  %v3035_v14 = vld [vmem:[#allocation2 + $0x18] sm:$0xff]   ;;  %v3036_v15 = vld [vmem:[#allocation2 + $0x20] sm:$0xff]   ;;  %v3474_v25 = vmov 1.0|1.0   ;;  %vm716_vm12 = vcmask 261120  }
  0x61   :  { %v3643_v1 = vshrl.u32 %v128_v0, 7  ;;  %2895 = vmatpush3.bf16.msra.mxu0 %v3032_v9  ;;  %v3037_v16 = vld [vmem:[#allocation2 + $0x28] sm:$0xff]   ;;  %v3038_v17 = vld [vmem:[#allocation2 + $0x30] sm:$0xff]   ;;  %v3039_v18 = vld [vmem:[#allocation2 + $0x38] sm:$0xff]   ;;  %v3664_v19 = vand.u32 127, %v128_v0  ;;  %s3477_s20 = smov 127  }
  0x62   :  { %2896 = vmatprep.subr.bf16.mxu0 %v3033_v10  ;;  %v3040_v30 = vld [vmem:[#allocation6 + $0x4] ss:$12 sps:$4 sm:$0xff]   ;;  %v3042_v31 = vld [vmem:[#allocation6] ss:$12 sps:$4 sm:$0xff]   ;;  %v3043_v32 = vld [vmem:[#allocation6 + $0x1c] ss:$12 sps:$4 sm:$0xff]  }
  0x63   :  { %v3646_v2 = vsub.s32 2, %v3643_v1  ;;  %v3649_v3 = vsub.s32 0, %v3643_v1  ;;  %v3652_v4 = vsub.s32 3, %v3643_v1  ;;  %v3655_v5 = vsub.s32 1, %v3643_v1  ;;  %v3046_v33 = vld [vmem:[#allocation6 + $0x8] ss:$12 sps:$4 sm:$0xff]   ;;  %533 = vmatprep.subr.bf16.mxu1 %v3040_v30 }
  0x64   :  { %v164_v20 = vadd.s32 64, %v3643_v1  ;;  %534 = vmatpush1.bf16.msra.mxu1 %v3042_v31  ;;  %v3045_v34 = vld [vmem:[#allocation6 + $0x18] ss:$12 sps:$4 sm:$0xff]   ;;  %v3047_v51 = vld [vmem:[#allocation6 + $0x34] ss:$12 sps:$4 sm:$0xff]   ;;  %s3478_s29 = smov 1.0  }
  0x65   :  { %v127_v6 = vld [vmem:[%s4259_s26] sm:$0xf]  ;;  %2897 = vmatpush3.bf16.msra.mxu0 %v3033_v10  ;;  %535 = vmatprep.subr.bf16.mxu1 %v3043_v32  ;;  %v3049_v52 = vld [vmem:[#allocation6 + $0x30] ss:$12 sps:$4 sm:$0xff]   ;;  %v3051_v54 = vld [vmem:[#allocation6 + $0x4c] ss:$12 sps:$4 sm:$0xff]  }
  0x66   :  { %v149_v7 = vrot.slane %v127_v6, %v3646_v2  ;;  %v135_v8 = vrot.slane %v127_v6, %v3649_v3  ;;  %v156_v11 = vrot.slane %v127_v6, %v3652_v4  ;;  %v142_v12 = vrot.slane %v127_v6, %v3655_v5  ;;  %2898 = vmatprep.subr.bf16.mxu0 %v3034_v13  ;;  %v3050_v53 = vld [vmem:[#allocation6 + $0x20] ss:$12 sps:$4 sm:$0xff]   ;;  %v3053_v55 = vld [vmem:[#allocation6 + $0x48] ss:$12 sps:$4 sm:$0xff]   ;;  %v3054_v56 = vld [vmem:[#allocation6 + $0x38] ss:$12 sps:$4 sm:$0xff]  }
  0x67   :  { %vm165_vm0 = vcmp.eq.s32.totalorder %v3664_v19, %v164_v20  ;;  %v3055_v57 = vld [vmem:[#allocation6 + $0x64] ss:$12 sps:$4 sm:$0xff]   ;;  %v3057_v58 = vld [vmem:[#allocation6 + $0x60] ss:$12 sps:$4 sm:$0xff]   ;;  %v3059_v60 = vld [vmem:[#allocation6 + $0x7c] ss:$12 sps:$4 sm:$0xff]  }
  0x68   :  { %151 = vbcast.lane.b32.xlu1 %v149_v7, 256  ;;  %137 = vbcast.lane.b32.xlu0 %v135_v8, 256  ;;  %v3058_v59 = vld [vmem:[#allocation6 + $0x50] ss:$12 sps:$4 sm:$0xff]   ;;  %v3061_v61 = vld [vmem:[#allocation6 + $0x78] ss:$12 sps:$4 sm:$0xff]  }
  0x69   :  { %2899 = vmatpush3.bf16.msra.mxu0 %v3034_v13  ;;  %536 = vmatpush1.bf16.msra.mxu1 %v3045_v34  ;;  %v3062_v62 = vld [vmem:[#allocation6 + $0x68] ss:$12 sps:$4 sm:$0xff]   ;;  %v3065_v0 = vld [vmem:[#allocation6 + $0x90] ss:$12 sps:$4 sm:$0xff]   ;;  %v3066_v6 = vld [vmem:[#allocation6 + $0x80] ss:$12 sps:$4 sm:$0xff]  }
  0x6a   :  { %2900 = vmatprep.subr.bf16.mxu0 %v3035_v14  ;;  %537 = vmatprep.subr.bf16.mxu1 %v3047_v51  ;;  %v3063_v63 = vld [vmem:[#allocation6 + $0x94] ss:$12 sps:$4 sm:$0xff]   ;;  %v3067_v7 = vld [vmem:[#allocation6 + $0xac] ss:$12 sps:$4 sm:$0xff]   ;;  %v3475_v10 = vmov 0   ;;  %s3479_s21 = smov [#allocation12]  }
  0x6b   :  { %v3069_v8 = vld [vmem:[#allocation6 + $0xa8] ss:$12 sps:$4 sm:$0xff]   ;;  %v3070_v9 = vld [vmem:[#allocation6 + $0x98] ss:$12 sps:$4 sm:$0xff]   ;;  %565 = vmatprep.mubr.bf16.mxu1 %v3475_v10  ;;  %s2615_s11 = sshll.u32 %s3479_s21, 4  ;;  %s2616_s11 = int_to_ptr.vmem [resolvable:$true] %s2615_s11 }
  0x6c   :  { %158 = vbcast.lane.b32.xlu1 %v156_v11, 256  ;;  %144 = vbcast.lane.b32.xlu0 %v142_v12, 256  ;;  %v3071_v11 = vld [vmem:[#allocation6 + $0xb0] ss:$12 sps:$4 sm:$0xff]   ;;  %s3419_s24 = scalar_lea.vmem %s2616_s11, 1024  ;;  %p3424_p13 = scmp.lt.s32.totalorder %s2616_s11, %s2616_s11 }
  0x6d   :  { %2901 = vmatpush3.bf16.msra.mxu0 %v3035_v14  ;;  %538 = vmatpush1.bf16.msra.mxu1 %v3049_v52  ;;  %p3420_p12 = scmp.ne.s32.totalorder %s2616_s11, %s3419_s24  ;;  %p3425_p0 = scmp.lt.s32.totalorder %s3419_s24, %s3419_s24 }
  0x6e   :  { %2902 = vmatprep.subr.bf16.mxu0 %v3036_v15  ;;  %539 = vmatprep.subr.bf16.mxu1 %v3051_v54 }
  0x6f   :  { %p3426_p1 = por %p3425_p0, %p3424_p13 }
  0x71   :  { %2903 = vmatpush3.bf16.msra.mxu0 %v3036_v15  ;;  %540 = vmatpush1.bf16.msra.mxu1 %v3053_v55  ;;  %p3427_p2 = pnand %p3426_p1, %p3420_p12 }
  0x72   :  { %2904 = vmatprep.subr.bf16.mxu0 %v3037_v16  ;;  %541 = vmatprep.subr.bf16.mxu1 %v3055_v57 }
  0x75   :  { %2905 = vmatpush3.bf16.msra.mxu0 %v3037_v16  ;;  %542 = vmatpush1.bf16.msra.mxu1 %v3057_v58 }
  0x76   :  { %2906 = vmatprep.subr.bf16.mxu0 %v3038_v17  ;;  %543 = vmatprep.subr.bf16.mxu1 %v3059_v60 }
  0x79   :  { %2907 = vmatpush3.bf16.msra.mxu0 %v3038_v17  ;;  %544 = vmatpush1.bf16.msra.mxu1 %v3061_v61 }
  0x7a   :  { %2908 = vmatprep.subr.bf16.mxu0 %v3039_v18  ;;  %545 = vmatprep.subr.bf16.mxu1 %v3063_v63 }
  0x7d   :  { %2909 = vmatpush3.bf16.msra.mxu0 %v3039_v18  ;;  %546 = vmatpush1.bf16.msra.mxu1 %v3065_v0 }
  0x7e   :  { %2914 = vmatprep.subr.bf16.mxu0 %v3046_v33  ;;  %547 = vmatprep.subr.bf16.mxu1 %v3067_v7 }
  0x81   :  { %548 = vmatpush1.bf16.msra.mxu1 %v3069_v8 }
  0xda   :  { %v152_v21 = vpop.permute.xlu1 %151  ;;  %v138_v22 = vpop.permute.xlu0 %137 }
  0xdb   :  { %vm162_vm1 = vcmp.eq.s32.totalorder %v3664_v19, %v152_v21  ;;  %vm160_vm2 = vcmp.eq.s32.totalorder %v3664_v19, %v138_v22 }
  0xdc   :  { %vm168_vm3 = vmor %vm162_vm1, %vm165_vm0  ;;  %vm2439_vm1 = vcmask 7168  }
  0xdd   :  { %vm166_vm6 = vmor %vm160_vm2, %vm165_vm0 }
  0xde   :  { %v159_v23 = vpop.permute.xlu1 %158  ;;  %v145_v24 = vpop.permute.xlu0 %144 }
  0xdf   :  { %vm163_vm4 = vcmp.eq.s32.totalorder %v3664_v19, %v159_v23  ;;  %vm161_vm5 = vcmp.eq.s32.totalorder %v3664_v19, %v145_v24 }
  0xe0   :  { %vm169_vm7 = vmor %vm163_vm4, %vm165_vm0 }
  0xe1   :  { %vm2658_vm8 = vmpackc.low %vm169_vm7, %vm168_vm3 }
  0xe2   :  { %vm167_vm9 = vmor %vm161_vm5, %vm165_vm0 }
  0xe3   :  { %vm2656_vm10 = vmpackc.low %vm167_vm9, %vm166_vm6 }
  0xe4   :  { %2910 = vmatprep.mubr.msk.bf16.mxu0 %vm2656_vm10, %v3474_v25 }
  0xe5   :  { %2911 = vmatmul.mubr.msk.bf16.vlgmr.msra.gmra.mrb[0].mxu0 %vm2658_vm8, %v3474_v25  ;;  %v3692_v25 = vld [vmem:[%s4251_s13] sm:$0x3f] }
  0xe6   :  { %2915 = vmatpush3.bf16.msra.mxu0 %v3046_v33  ;;  %v349_v32 = vrot.slane %v3692_v25, %v3655_v5 }
  0xe7   :  { %2916 = vmatprep.subr.bf16.mxu0 %v3050_v53 }
  0xea   :  { %2917 = vmatpush3.bf16.msra.mxu0 %v3050_v53 }
  0xeb   :  { %2918 = vmatprep.subr.bf16.mxu0 %v3054_v56 }
  0xee   :  { %2919 = vmatpush3.bf16.msra.mxu0 %v3054_v56 }
  0xef   :  { %2920 = vmatprep.subr.bf16.mxu0 %v3058_v59 }
  0xf2   :  { %2921 = vmatpush3.bf16.msra.mxu0 %v3058_v59 }
  0xf3   :  { %2922 = vmatprep.subr.bf16.mxu0 %v3062_v62 }
  0xf6   :  { %2923 = vmatpush3.bf16.msra.mxu0 %v3062_v62 }
  0xf7   :  { %2924 = vmatprep.subr.bf16.mxu0 %v3066_v6 }
  0xfa   :  { %2925 = vmatpush3.bf16.msra.mxu0 %v3066_v6 }
  0xfb   :  { %2926 = vmatprep.subr.bf16.mxu0 %v3070_v9 }
  0xfe   :  { %2927 = vmatpush3.bf16.msra.mxu0 %v3070_v9 }
  0xff   :  { %2928 = vmatprep.subr.bf16.mxu0 %v3071_v11 }
 0x102   :  { %2929 = vmatpush3.bf16.msra.mxu0 %v3071_v11 }
 0x1b8   :  { %v2912_v26 = vpop.f32.mrb[0].mxu0 }
 0x1b9   :  { %v278_v27 = vpop.f32.mrb[1].mxu0 }
 0x1ba   :  { %293 = vadd.xlane.f32.xlu0 %v278_v27  ;;  %v2913_v28 = vpop.f32.mrb[2].mxu0 }
 0x1bb   :  { %v281_v29 = vpop.f32.mrb[3].mxu0 }
 0x1bc   :  { %295 = vadd.xlane.f32.xlu1 %v281_v29 }
 0x1be   :  { %297 = vadd.xlane.f32.xlu0 %v2912_v26 }
 0x1c2   :  { %299 = vadd.xlane.f32.xlu0 %v2913_v28 }
 0x247   :  { %v294_v35 = vpop.xlane.xlu0 %293 }
 0x248   :  { %v302_v36 = vmul.f32 0.0078125, %v294_v35 }
 0x249   :  { %v296_v37 = vpop.xlane.xlu1 %295 }
 0x24a   :  { %v3672_v38 = vsub.f32 %v278_v27, %v302_v36  ;;  %v303_v39 = vmul.f32 0.0078125, %v296_v37 }
 0x24b   :  { %v298_v40 = vpop.xlane.xlu0 %297 }
 0x24c   :  { %v3674_v41 = vsub.f32 %v281_v29, %v303_v39  ;;  %v304_v42 = vmul.f32 0.0078125, %v298_v40  ;;  %v310_v43 = vmul.f32 %v3672_v38, %v3672_v38 }
 0x24e   :  { %v3678_v44 = vsub.f32 %v2912_v26, %v304_v42  ;;  %314 = vadd.xlane.f32.xlu1 %v310_v43  ;;  %v311_v45 = vmul.f32 %v3674_v41, %v3674_v41  ;;  %v341_v26 = vrot.slane %v3692_v25, %v3649_v3 }
 0x24f   :  { %v300_v46 = vpop.xlane.xlu0 %299 }
 0x250   :  { %v305_v47 = vmul.f32 0.0078125, %v300_v46  ;;  %316 = vadd.xlane.f32.xlu0 %v311_v45  ;;  %v312_v48 = vmul.f32 %v3678_v44, %v3678_v44  ;;  %v388_v46 = vld [vmem:[%s4244_s6] sm:$0x7]  ;;  %s4260_s6 = sld [smem:[#allocation20_spill]] }
 0x251   :  { %v401_v58 = vrot.slane %v388_v46, %v3646_v2 }
 0x252   :  { %v3684_v49 = vsub.f32 %v2913_v28, %v305_v47  ;;  %318 = vadd.xlane.f32.xlu1 %v312_v48  ;;  %v393_v47 = vrot.slane %v388_v46, %v3649_v3 }
 0x254   :  { %v313_v50 = vmul.f32 %v3684_v49, %v3684_v49 }
 0x256   :  { %320 = vadd.xlane.f32.xlu0 %v313_v50 }
 0x2db   :  { %v315_v12 = vpop.xlane.xlu1 %314 }
 0x2dc   :  { %v322_v13 = vmul.f32 0.0078125, %v315_v12 }
 0x2dd   :  { %v317_v14 = vpop.xlane.xlu0 %316 }
 0x2de   :  { %v326_v15 = vadd.f32 1e-12, %v322_v13  ;;  %v323_v16 = vmul.f32 0.0078125, %v317_v14 }
 0x2df   :  { %v319_v17 = vpop.xlane.xlu1 %318 }
 0x2e0   :  { %3184 = vrsqrt.f32 %v326_v15  ;;  %v327_v18 = vadd.f32 1e-12, %v323_v16  ;;  %v324_v20 = vmul.f32 0.0078125, %v319_v17 }
 0x2e2   :  { %3186 = vrsqrt.f32 %v327_v18  ;;  %v328_v21 = vadd.f32 1e-12, %v324_v20 }
 0x2e3   :  { %v321_v22 = vpop.xlane.xlu0 %320 }
 0x2e4   :  { %3188 = vrsqrt.f32 %v328_v21  ;;  %v325_v23 = vmul.f32 0.0078125, %v321_v22 }
 0x2e6   :  { %v329_v24 = vadd.f32 1e-12, %v325_v23 }
 0x2e8   :  { %3190 = vrsqrt.f32 %v329_v24 }
 0x2ea   :  { %v3185_v27 = vpop.eup %3184 }
 0x2eb   :  { %v334_v28 = vmul.f32 %v3185_v27, %v3672_v38 }
 0x2ec   :  { %v3187_v29 = vpop.eup %3186 }
 0x2ed   :  { %v335_v30 = vmul.f32 %v3187_v29, %v3674_v41  ;;  %v342_v31 = vmul.f32 %v341_v26, %v334_v28 }
 0x2ee   :  { %v3189_v33 = vpop.eup %3188 }
 0x2ef   :  { %v336_v34 = vmul.f32 %v3189_v33, %v3678_v44  ;;  %v343_v35 = vmul.f32 %v341_v26, %v335_v30  ;;  %v3701_v36 = vadd.f32 %v349_v32, %v342_v31 }
 0x2f1   :  { %v3703_v37 = vadd.f32 %v349_v32, %v343_v35  ;;  %v344_v42 = vmul.f32 %v341_v26, %v336_v34  ;;  %v635_v34 = vld [vmem:[%s4240_s2] sm:$0xff] }
 0x2f2   :  { %v3191_v39 = vpop.eup %3190 }
 0x2f3   :  { %v337_v40 = vmul.f32 %v3191_v39, %v3684_v49  ;;  %v354_v38 = vpack.c.bf16 %v3703_v37, %v3701_v36  ;;  %v3709_v43 = vadd.f32 %v349_v32, %v344_v42  ;;  %v397_v49 = vrot.slane %v388_v46, %v3655_v5  ;;  %v636_v42 = vld [vmem:[%s4240_s2 + $0x8] sm:$0xff] }
 0x2f5   :  { %566 = vmatmul.mubr.bf16.vlgmr.msra.gmra.mrb[0].mxu1 %v354_v38  ;;  %2930 = vmatprep.mubr.bf16.mxu0 %v354_v38  ;;  %v345_v41 = vmul.f32 %v341_v26, %v337_v40 }
 0x2f6   :  { %575 = vmatprep.mubr.bf16.mxu1 %v3475_v10 }
 0x2f7   :  { %v3711_v44 = vadd.f32 %v349_v32, %v345_v41  ;;  %v637_v41 = vld [vmem:[%s4240_s2 + $0x10] sm:$0xff] }
 0x2f9   :  { %v355_v45 = vpack.c.bf16 %v3711_v44, %v3709_v43 }
 0x2fb   :  { %2931 = vmatmul.mubr.bf16.vlgmr.msra.gmra.mrb[4].mxu0 %v355_v45 }
 0x2fd   :  { %576 = vmatmul.mubr.bf16.gmra.mrb[4].mxu1 %v355_v45 }
 0x3c8   :  { %v567_v48 = vpop.f32.mrb[0].mxu1 }
 0x3c9   :  { %v569_v50 = vpop.f32.mrb[1].mxu1  ;;  %v568_v52 = vadd.f32 %v567_v48, %v393_v47 }
 0x3ca   :  { %v571_v51 = vpop.f32.mrb[2].mxu1  ;;  %v570_v55 = vadd.f32 %v569_v50, %v397_v49 }
 0x3cb   :  { %v572_v53 = vadd.f32 %v571_v51, %v393_v47  ;;  %v573_v54 = vpop.f32.mrb[3].mxu1  ;;  %v638_v51 = vld [vmem:[%s4240_s2 + $0x18] sm:$0xff] }
 0x3cc   :  { %v574_v56 = vadd.f32 %v573_v54, %v397_v49 }
 0x3cd   :  { %v640_v57 = vpack.c.bf16 %v572_v53, %v568_v52 }
 0x3ce   :  { %v642_v59 = vpack.c.bf16 %v574_v56, %v570_v55  ;;  %v2932_v60 = vpop.f32.mrb[4].mxu0 }
 0x3cf   :  { %v620_v61 = vpop.f32.mrb[5].mxu0  ;;  %2938 = vmatprep.mubr.msk.bf16.mxu1 %vm646_vm11, %v640_v57  ;;  %v629_v6 = vadd.f32 %v2932_v60, %v401_v58 }
 0x3d0   :  { %v577_v62 = vpop.f32.mrb[4].mxu1  ;;  %v2933_v63 = vpop.f32.mrb[6].mxu0  ;;  %925 = vrot.lane.b32.xlu1 %v642_v59, %s3470_s9  ;;  %2998 = vmatprep.subr.msk.bf16.mxu1 %vm646_vm11, %v642_v59  ;;  %v654_v0 = vsel %vm646_vm11, %v642_v59, 0  ;;  %v621_v11 = vadd.f32 %v620_v61, %v401_v58 }
 0x3d1   :  { %v632_v7 = vadd.f32 %v2933_v63, %v401_v58  ;;  %v579_v8 = vpop.f32.mrb[5].mxu1  ;;  %v623_v9 = vpop.f32.mrb[7].mxu0  ;;  %2935 = vmatpush3.bf16.xpose.msra.mxu1 %v654_v0  ;;  %v578_v14 = vadd.f32 %v577_v62, %v393_v47 }
 0x3d2   :  { %v624_v12 = vadd.f32 %v623_v9, %v401_v58  ;;  %v581_v13 = vpop.f32.mrb[6].mxu1  ;;  %v580_v18 = vadd.f32 %v579_v8, %v397_v49 }
 0x3d3   :  { %v3725_v15 = vpack.c.bf16 %v632_v7, %v629_v6  ;;  %v582_v16 = vadd.f32 %v581_v13, %v393_v47  ;;  %v583_v17 = vpop.f32.mrb[7].mxu1 }
 0x3d4   :  { %v3727_v20 = vpack.c.bf16 %v624_v12, %v621_v11  ;;  %v584_v21 = vadd.f32 %v583_v17, %v397_v49  ;;  %919 = vrot.lane.b32.xlu1 %v640_v57, %s3470_s9 }
 0x3d5   :  { %v641_v22 = vpack.c.bf16 %v582_v16, %v578_v14 }
 0x3d6   :  { %v643_v23 = vpack.c.bf16 %v584_v21, %v580_v18 }
 0x3d8   :  { %927 = vrot.lane.b32.xlu0 %v643_v23, %s3470_s9  ;;  %2999 = vmatprep.subr.msk.bf16.mxu1 %vm646_vm11, %v643_v23  ;;  %v657_v24 = vsel %vm646_vm11, %v643_v23, 0 }
 0x3d9   :  { %921 = vrot.lane.b32.xlu1 %v641_v22, %s3470_s9  ;;  %2937 = vmatpush3.bf16.xpose.msra.mxu1 %v657_v24 }
 0x3da   :  { %2942 = vmatprep.subr.bf16.mxu1 %v3727_v20 }
 0x3e0   :  { %2939 = vmatmul.mubr.msk.bf16.vlgmr.msra.gmra.mrb[8].mxu1 %vm646_vm11, %v641_v22 }
 0x3e1   :  { %2943 = vmatpush3.bf16.msra.mxu1 %v3727_v20 }
 0x3e2   :  { %2944 = vmatprep.subr.bf16.mxu1 %v3725_v15 }
 0x3e5   :  { %2945 = vmatpush3.bf16.msra.mxu1 %v3725_v15 }
 0x442   :  { %v926_v26 = vpop.permute.xlu1 %925 }
 0x443   :  { %v936_v27 = vsel %vm646_vm11, %v926_v26, 0  ;;  %3000 = vmatprep.subr.msk.bf16.mxu0 %vm646_vm11, %v926_v26 }
 0x444   :  { %2963 = vmatpush3.bf16.xpose.msra.mxu0 %v936_v27 }
 0x446   :  { %v920_v28 = vpop.permute.xlu1 %919 }
 0x447   :  { %2966 = vmatprep.mubr.msk.bf16.mxu0 %vm646_vm11, %v920_v28 }
 0x44a   :  { %v928_v29 = vpop.permute.xlu0 %927 }
 0x44b   :  { %v939_v30 = vsel %vm646_vm11, %v928_v29, 0  ;;  %3001 = vmatprep.subr.msk.bf16.mxu0 %vm646_vm11, %v928_v29  ;;  %v922_v31 = vpop.permute.xlu1 %921 }
 0x44c   :  { %2965 = vmatpush3.bf16.xpose.msra.mxu0 %v939_v30 }
 0x453   :  { %2967 = vmatmul.mubr.msk.bf16.vlgmr.msra.gmra.mrb[8].mxu0 %vm646_vm11, %v922_v31 }
 0x454   :  { %1512 = vmatprep.mubr.bf16.mxu0 %v3475_v10 }
 0x4b3   :  { %v2940_v32 = vpop.f32.mrb[8].mxu1 }
 0x4b4   :  { %v693_v33 = vpop.f32.mrb[9].mxu1  ;;  %v710_v35 = vmul.f32 0.125, %v2940_v32 }
 0x4b5   :  { %v708_v39 = vmul.f32 0.125, %v693_v33  ;;  %v2941_v40 = vpop.f32.mrb[10].mxu1 }
 0x4b6   :  { %v696_v38 = vpop.f32.mrb[11].mxu1  ;;  %v711_v47 = vmul.f32 0.125, %v2941_v40  ;;  %v714_v50 = vadd.f32 %v710_v35, %v637_v41 }
 0x4b7   :  { %v709_v45 = vmul.f32 0.125, %v696_v38  ;;  %v712_v46 = vadd.f32 %v708_v39, %v635_v34  ;;  %v3072_v38 = vld [vmem:[#allocation8] sm:$0xff]  }
 0x4b8   :  { %v723_v53 = vsel %vm716_vm12, %v714_v50, -inf  ;;  %v715_v54 = vadd.f32 %v711_v47, %v638_v51  ;;  %2950 = vmatprep.subr.bf16.mxu1 %v3072_v38 }
 0x4b9   :  { %v717_v48 = vsel %vm716_vm12, %v712_v46, -inf  ;;  %v713_v49 = vadd.f32 %v709_v45, %v636_v42 }
 0x4ba   :  { %718 = vmax.xlane.f32.xlu0 %v717_v48  ;;  %v726_v55 = vsel %vm716_vm12, %v715_v54, -inf }
 0x4bb   :  { %v720_v52 = vsel %vm716_vm12, %v713_v49, -inf }
 0x4bc   :  { %721 = vmax.xlane.f32.xlu1 %v720_v52 }
 0x4be   :  { %724 = vmax.xlane.f32.xlu0 %v723_v53 }
 0x4c2   :  { %727 = vmax.xlane.f32.xlu0 %v726_v55 }
 0x526   :  { %v2968_v56 = vpop.f32.mrb[8].mxu0 }
 0x527   :  { %v975_v57 = vpop.f32.mrb[9].mxu0  ;;  %v992_v23 = vmul.f32 0.125, %v2968_v56 }
 0x528   :  { %v2969_v58 = vpop.f32.mrb[10].mxu0  ;;  %v990_v16 = vmul.f32 0.125, %v975_v57 }
 0x529   :  { %v978_v59 = vpop.f32.mrb[11].mxu0  ;;  %v993_v29 = vmul.f32 0.125, %v2969_v58  ;;  %v996_v32 = vadd.f32 %v992_v23, %v637_v41  ;;  %v3074_v23 = vld [vmem:[#allocation8 + $0x10] sm:$0xff]  }
 0x52a   :  { %v991_v24 = vmul.f32 0.125, %v978_v59  ;;  %v994_v27 = vadd.f32 %v990_v16, %v635_v34 }
 0x52b   :  { %v1004_v35 = vsel %vm716_vm12, %v996_v32, -inf  ;;  %v997_v40 = vadd.f32 %v993_v29, %v638_v51 }
 0x52c   :  { %v998_v30 = vsel %vm716_vm12, %v994_v27, -inf  ;;  %v995_v33 = vadd.f32 %v991_v24, %v636_v42  ;;  %v3075_v24 = vld [vmem:[#allocation8 + $0x18] sm:$0xff]  }
 0x52d   :  { %v1007_v34 = vsel %vm716_vm12, %v997_v40, -inf }
 0x52e   :  { %v1001_v39 = vsel %vm716_vm12, %v995_v33, -inf }
 0x547   :  { %v719_v60 = vpop.xlane.xlu0 %718 }
 0x548   :  { %v729_v61 = vsub.f32 %v712_v46, %v719_v60 }
 0x549   :  { %v722_v62 = vpop.xlane.xlu1 %721 }
 0x54a   :  { %v733_v63 = vmul.f32 1.442695, %v729_v61  ;;  %v730_v0 = vsub.f32 %v713_v49, %v722_v62 }
 0x54b   :  { %v725_v6 = vpop.xlane.xlu0 %724 }
 0x54c   :  { %3192 = vpow2.f32 %v733_v63  ;;  %v735_v7 = vmul.f32 1.442695, %v730_v0  ;;  %v731_v8 = vsub.f32 %v714_v50, %v725_v6 }
 0x54e   :  { %3194 = vpow2.f32 %v735_v7  ;;  %v737_v9 = vmul.f32 1.442695, %v731_v8 }
 0x54f   :  { %v728_v11 = vpop.xlane.xlu0 %727 }
 0x550   :  { %3196 = vpow2.f32 %v737_v9  ;;  %v732_v12 = vsub.f32 %v715_v54, %v728_v11  ;;  %v3073_v11 = vld [vmem:[#allocation8 + $0x8] sm:$0xff]  }
 0x552   :  { %v739_v13 = vmul.f32 1.442695, %v732_v12 }
 0x554   :  { %3198 = vpow2.f32 %v739_v13 }
 0x556   :  { %v3193_v14 = vpop.eup %3192 }
 0x557   :  { %v741_v17 = vsel %vm716_vm12, %v3193_v14, 0.0 }
 0x558   :  { %v3195_v18 = vpop.eup %3194  ;;  %742 = vadd.xlane.f32.xlu1 %v741_v17 }
 0x559   :  { %v744_v21 = vsel %vm716_vm12, %v3195_v18, 0.0 }
 0x55a   :  { %v3197_v22 = vpop.eup %3196  ;;  %745 = vadd.xlane.f32.xlu0 %v744_v21 }
 0x55b   :  { %v747_v26 = vsel %vm716_vm12, %v3197_v22, 0.0 }
 0x55c   :  { %748 = vadd.xlane.f32.xlu1 %v747_v26 }
 0x55e   :  { %v3199_v28 = vpop.eup %3198 }
 0x55f   :  { %v750_v31 = vsel %vm716_vm12, %v3199_v28, 0.0 }
 0x560   :  { %999 = vmax.xlane.f32.xlu1 %v998_v30  ;;  %751 = vadd.xlane.f32.xlu0 %v750_v31 }
 0x564   :  { %1005 = vmax.xlane.f32.xlu1 %v1004_v35  ;;  %1002 = vmax.xlane.f32.xlu0 %v1001_v39 }
 0x568   :  { %1008 = vmax.xlane.f32.xlu0 %v1007_v34 }
 0x5e5   :  { %v743_v45 = vpop.xlane.xlu1 %742 }
 0x5e6   :  { %3200 = vrcp.f32 %v743_v45 }
 0x5e7   :  { %v746_v46 = vpop.xlane.xlu0 %745 }
 0x5e8   :  { %3202 = vrcp.f32 %v746_v46 }
 0x5e9   :  { %v749_v41 = vpop.xlane.xlu1 %748 }
 0x5ea   :  { %3204 = vrcp.f32 %v749_v41 }
 0x5ed   :  { %v752_v42 = vpop.xlane.xlu0 %751  ;;  %v1000_v47 = vpop.xlane.xlu1 %999 }
 0x5ee   :  { %3206 = vrcp.f32 %v752_v42  ;;  %v1010_v49 = vsub.f32 %v994_v27, %v1000_v47 }
 0x5f0   :  { %v3201_v48 = vpop.eup %3200  ;;  %v1014_v58 = vmul.f32 1.442695, %v1010_v49 }
 0x5f1   :  { %v1003_v50 = vpop.xlane.xlu0 %1002  ;;  %v1006_v51 = vpop.xlane.xlu1 %1005  ;;  %v757_v54 = vmul.f32 %v3201_v48, %v3193_v14  ;;  %v3076_v48 = vld [vmem:[#allocation8 + $0x20] sm:$0xff]  }
 0x5f2   :  { %v3203_v52 = vpop.eup %3202  ;;  %v1012_v53 = vsub.f32 %v996_v32, %v1006_v51  ;;  %v1011_v56 = vsub.f32 %v995_v33, %v1003_v50  ;;  %v3077_v51 = vld [vmem:[#allocation8 + $0x28] sm:$0xff]  }
 0x5f3   :  { %v758_v55 = vmul.f32 %v3203_v52, %v3195_v18  ;;  %v3078_v52 = vld [vmem:[#allocation8 + $0x30] sm:$0xff]  }
 0x5f4   :  { %v1018_v57 = vmul.f32 1.442695, %v1012_v53  ;;  %v3205_v61 = vpop.eup %3204  ;;  %v1016_v0 = vmul.f32 1.442695, %v1011_v56  ;;  %v3079_v53 = vld [vmem:[#allocation8 + $0x38] sm:$0xff]  }
 0x5f5   :  { %v1009_v59 = vpop.xlane.xlu0 %1008  ;;  %v761_v60 = vpack.c.bf16 %v758_v55, %v757_v54  ;;  %v759_v7 = vmul.f32 %v3205_v61, %v3197_v22 }
 0x5f6   :  { %v1013_v62 = vsub.f32 %v997_v40, %v1009_v59  ;;  %3208 = vpow2.f32 %v1018_v57 }
 0x5f7   :  { %2946 = vmatprep.mubr.msk.bf16.mxu1 %vm716_vm12, %v761_v60  ;;  %3210 = vpow2.f32 %v1014_v58  ;;  %v2694_v60 = vld [vmem:[%s4246_s8] ss:$0 sm:$0xff] }
 0x5f8   :  { %v3207_v63 = vpop.eup %3206  ;;  %v1020_v6 = vmul.f32 1.442695, %v1013_v62 }
 0x5f9   :  { %v760_v8 = vmul.f32 %v3207_v63, %v3199_v28 }
 0x5fa   :  { %3212 = vpow2.f32 %v1020_v6 }
 0x5fb   :  { %v762_v9 = vpack.c.bf16 %v760_v8, %v759_v7  ;;  %3214 = vpow2.f32 %v1016_v0 }
 0x5fd   :  { %2947 = vmatmul.mubr.msk.bf16.vlgmr.msra.gmra.mrb[12].mxu1 %vm716_vm12, %v762_v9 }
 0x5fe   :  { %2951 = vmatpush3.bf16.msra.mxu1 %v3072_v38 }
 0x5ff   :  { %2952 = vmatprep.subr.bf16.mxu1 %v3073_v11 }
 0x600   :  { %v3209_v12 = vpop.eup %3208 }
 0x601   :  { %v1028_v13 = vsel %vm716_vm12, %v3209_v12, 0.0  ;;  %v3211_v14 = vpop.eup %3210 }
 0x602   :  { %2953 = vmatpush3.bf16.msra.mxu1 %v3073_v11  ;;  %1029 = vadd.xlane.f32.xlu1 %v1028_v13  ;;  %v1022_v21 = vsel %vm716_vm12, %v3211_v14, 0.0 }
 0x603   :  { %2954 = vmatprep.subr.bf16.mxu1 %v3074_v23 }
 0x604   :  { %v3213_v16 = vpop.eup %3212 }
 0x605   :  { %v1031_v17 = vsel %vm716_vm12, %v3213_v16, 0.0  ;;  %v3215_v18 = vpop.eup %3214 }
 0x606   :  { %1032 = vadd.xlane.f32.xlu0 %v1031_v17  ;;  %1023 = vadd.xlane.f32.xlu1 %v1022_v21  ;;  %v1025_v22 = vsel %vm716_vm12, %v3215_v18, 0.0  ;;  %v3082_v17 = vld [vmem:[#allocation9 + $0x4] ss:$16 sps:$4 sm:$0xff]   ;;  %v3085_v21 = vld [vmem:[#allocation9 + $0xc] ss:$16 sps:$4 sm:$0xff]  }
 0x607   :  { %2955 = vmatpush3.bf16.msra.mxu1 %v3074_v23  ;;  %1480 = vmatprep.subr.bf16.mxu0 %v3082_v17  ;;  %v3091_v23 = vld [vmem:[#allocation9 + $0x2c] ss:$16 sps:$4 sm:$0xff]  }
 0x608   :  { %2956 = vmatprep.subr.bf16.mxu1 %v3075_v24 }
 0x60a   :  { %1026 = vadd.xlane.f32.xlu0 %v1025_v22  ;;  %v3088_v22 = vld [vmem:[#allocation9 + $0x24] ss:$16 sps:$4 sm:$0xff]  }
 0x60b   :  { %2957 = vmatpush3.bf16.msra.mxu1 %v3075_v24 }
 0x617   :  { %1046 = vrot.lane.b32.xlu1 %v3727_v20, %s3470_s9 }
 0x620   :  { %1048 = vrot.lane.b32.xlu0 %v3725_v15, %s3470_s9 }
 0x68f   :  { %v1030_v26 = vpop.xlane.xlu1 %1029 }
 0x693   :  { %v1024_v27 = vpop.xlane.xlu1 %1023  ;;  %v1033_v29 = vpop.xlane.xlu0 %1032 }
 0x697   :  { %v1047_v28 = vpop.permute.xlu1 %1046  ;;  %v1027_v30 = vpop.xlane.xlu0 %1026 }
 0x698   :  { %2970 = vmatprep.subr.bf16.mxu1 %v1047_v28  ;;  %3216 = vrcp.f32 %v1027_v30 }
 0x699   :  { %3218 = vrcp.f32 %v1024_v27 }
 0x69a   :  { %3220 = vrcp.f32 %v1033_v29 }
 0x69b   :  { %3222 = vrcp.f32 %v1030_v26  ;;  %v1049_v42 = vpop.permute.xlu0 %1048 }
 0x6a2   :  { %v3217_v31 = vpop.eup %3216 }
 0x6a3   :  { %v3219_v33 = vpop.eup %3218  ;;  %v1039_v20 = vmul.f32 %v3217_v31, %v3215_v18  ;;  %v3083_v18 = vld [vmem:[#allocation9 + $0x8] ss:$16 sps:$4 sm:$0xff]  }
 0x6a4   :  { %v1038_v15 = vmul.f32 %v3219_v33, %v3211_v14  ;;  %v3221_v45 = vpop.eup %3220 }
 0x6a5   :  { %v3223_v41 = vpop.eup %3222  ;;  %v1041_v47 = vmul.f32 %v3221_v45, %v3213_v16  ;;  %v3080_v16 = vld [vmem:[#allocation9] ss:$16 sps:$4 sm:$0xff]  }
 0x6a6   :  { %v1042_v46 = vpack.c.bf16 %v1039_v20, %v1038_v15  ;;  %v1040_v49 = vmul.f32 %v3223_v41, %v3209_v12  ;;  %1481 = vmatpush1.bf16.msra.mxu0 %v3080_v16  ;;  %v3097_v15 = vld [vmem:[#allocation9 + $0x4c] ss:$16 sps:$4 sm:$0xff]   ;;  %v3092_v45 = vld [vmem:[#allocation9 + $0x40] ss:$16 sps:$4 sm:$0xff]   ;;  %v3100_v41 = vld [vmem:[#allocation9 + $0x64] ss:$16 sps:$4 sm:$0xff]  }
 0x6a7   :  { %1482 = vmatprep.subr.bf16.mxu0 %v3088_v22  ;;  %v1251_v22 = vrot.slane %v3692_v25, %v3646_v2 }
 0x6a8   :  { %v1043_v50 = vpack.c.bf16 %v1041_v47, %v1040_v49  ;;  %v3098_v47 = vld [vmem:[#allocation9 + $0x60] ss:$16 sps:$4 sm:$0xff]   ;;  %v3106_v49 = vld [vmem:[#allocation9 + $0x84] ss:$16 sps:$4 sm:$0xff]  }
 0x6d0   :  { %v2948_v32 = vpop.f32.mrb[12].mxu1 }
 0x6d1   :  { %v803_v35 = vpop.f32.mrb[13].mxu1 }
 0x6d2   :  { %v2949_v39 = vpop.f32.mrb[14].mxu1 }
 0x6d3   :  { %v819_v40 = vpack.c.bf16 %v2949_v39, %v2948_v32  ;;  %v806_v34 = vpop.f32.mrb[15].mxu1 }
 0x6d4   :  { %v818_v38 = vpack.c.bf16 %v806_v34, %v803_v35 }
 0x6d6   :  { %2958 = vmatprep.mubr.msk.bf16.mxu1 %vm646_vm11, %v818_v38  ;;  %v3094_v38 = vld [vmem:[#allocation9 + $0x44] ss:$16 sps:$4 sm:$0xff]  }
 0x6d7   :  { %2959 = vmatmul.mubr.msk.bf16.vlgmr.msra.gmra.mrb[16].mxu1 %vm646_vm11, %v819_v40 }
 0x6d8   :  { %2971 = vmatpush3.bf16.msra.mxu1 %v1047_v28  ;;  %2974 = vmatprep.mubr.msk.bf16.mxu1 %vm716_vm12, %v1042_v46  ;;  %v3095_v46 = vld [vmem:[#allocation9 + $0x48] ss:$16 sps:$4 sm:$0xff]  }
 0x6d9   :  { %2972 = vmatprep.subr.bf16.mxu1 %v1049_v42 }
 0x6dc   :  { %2973 = vmatpush3.bf16.msra.mxu1 %v1049_v42  ;;  %v3103_v42 = vld [vmem:[#allocation9 + $0x6c] ss:$16 sps:$4 sm:$0xff]  }
 0x6dd   :  { %2978 = vmatprep.subr.bf16.mxu1 %v3076_v48 }
 0x6df   :  { %2975 = vmatmul.mubr.msk.bf16.vlgmr.msra.gmra.mrb[20].mxu1 %vm716_vm12, %v1043_v50  ;;  %v3109_v50 = vld [vmem:[#allocation9 + $0x8c] ss:$16 sps:$4 sm:$0xff]  }
 0x6e0   :  { %2979 = vmatpush3.bf16.msra.mxu1 %v3076_v48  ;;  %v3101_v48 = vld [vmem:[#allocation9 + $0x68] ss:$16 sps:$4 sm:$0xff]  }
 0x6e1   :  { %2980 = vmatprep.subr.bf16.mxu1 %v3077_v51 }
 0x6e4   :  { %2981 = vmatpush3.bf16.msra.mxu1 %v3077_v51  ;;  %v3104_v51 = vld [vmem:[#allocation9 + $0x80] ss:$16 sps:$4 sm:$0xff]  }
 0x6e5   :  { %2982 = vmatprep.subr.bf16.mxu1 %v3078_v52 }
 0x6e8   :  { %2983 = vmatpush3.bf16.msra.mxu1 %v3078_v52  ;;  %v3107_v52 = vld [vmem:[#allocation9 + $0x88] ss:$16 sps:$4 sm:$0xff]  }
 0x6e9   :  { %2984 = vmatprep.subr.bf16.mxu1 %v3079_v53 }
 0x6ec   :  { %2985 = vmatpush3.bf16.msra.mxu1 %v3079_v53  ;;  %v3112_v53 = vld [vmem:[#allocation9 + $0xa4] ss:$16 sps:$4 sm:$0xff]  }
 0x6ed   :  { %1533 = vmatprep.subr.bf16.mxu1 %v3085_v21 }
 0x7b2   :  { %v2976_v54 = vpop.f32.mrb[20].mxu1 }
 0x7b3   :  { %v1092_v55 = vpop.f32.mrb[21].mxu1 }
 0x7b4   :  { %v2977_v56 = vpop.f32.mrb[22].mxu1 }
 0x7b5   :  { %v1108_v57 = vpack.c.bf16 %v2977_v56, %v2976_v54  ;;  %v1095_v58 = vpop.f32.mrb[23].mxu1  ;;  %v3115_v54 = vld [vmem:[#allocation9 + $0xac] ss:$16 sps:$4 sm:$0xff]   ;;  %v3113_v56 = vld [vmem:[#allocation9 + $0xa8] ss:$16 sps:$4 sm:$0xff]  }
 0x7b6   :  { %v1107_v59 = vpack.c.bf16 %v1095_v58, %v1092_v55  ;;  %v3110_v55 = vld [vmem:[#allocation9 + $0xa0] ss:$16 sps:$4 sm:$0xff]   ;;  %v3121_v58 = vld [vmem:[#allocation9 + $0xcc] ss:$16 sps:$4 sm:$0xff]  }
 0x7b8   :  { %2986 = vmatprep.mubr.msk.bf16.mxu1 %vm646_vm11, %v1107_v59  ;;  %v3116_v59 = vld [vmem:[#allocation9 + $0xc0] ss:$16 sps:$4 sm:$0xff]  }
 0x7b9   :  { %2987 = vmatmul.mubr.msk.bf16.vlgmr.msra.gmra.mrb[16].mxu1 %vm646_vm11, %v1108_v57  ;;  %v3118_v57 = vld [vmem:[#allocation9 + $0xc4] ss:$16 sps:$4 sm:$0xff]  }
 0x7ba   :  { %1565 = vmatprep.mubr.bf16.mxu1 %v3475_v10  ;;  %1534 = vmatpush1.bf16.msra.mxu1 %v3083_v18 }
 0x7bb   :  { %1535 = vmatprep.subr.bf16.mxu1 %v3091_v23 }
 0x88c   :  { %v2988_v61 = vpop.f32.mrb[16].mxu1 }
 0x88d   :  { %v1181_v62 = vpop.f32.mrb[17].mxu1  ;;  %v2990_v7 = vadd.f32 %v2988_v61, %v2694_v60  ;;  %v3124_v61 = vld [vmem:[#allocation9 + $0xe4] ss:$16 sps:$4 sm:$0xff]  }
 0x88e   :  { %v2991_v63 = vadd.f32 %v2694_v60, %v1181_v62  ;;  %v2989_v0 = vpop.f32.mrb[18].mxu1  ;;  %v3127_v62 = vld [vmem:[#allocation9 + $0xec] ss:$16 sps:$4 sm:$0xff]  }
 0x88f   :  { %v1184_v6 = vpop.f32.mrb[19].mxu1  ;;  %v2992_v11 = vadd.f32 %v2989_v0, %v2694_v60  ;;  %v1202_v13 = vadd.f32 %v2990_v7, %v3709_v43  ;;  %v3125_v0 = vld [vmem:[#allocation9 + $0xe8] ss:$16 sps:$4 sm:$0xff]  }
 0x890   :  { %v2993_v8 = vadd.f32 %v2694_v60, %v1184_v6  ;;  %v1200_v9 = vadd.f32 %v2991_v63, %v3701_v36  ;;  %v3086_v36 = vld [vmem:[#allocation9 + $0x20] ss:$16 sps:$4 sm:$0xff]   ;;  %v3119_v60 = vld [vmem:[#allocation9 + $0xc8] ss:$16 sps:$4 sm:$0xff]  }
 0x891   :  { %v1203_v14 = vadd.f32 %v2992_v11, %v3711_v44  ;;  %1483 = vmatpush1.bf16.msra.mxu0 %v3086_v36  ;;  %v3122_v63 = vld [vmem:[#allocation9 + $0xe0] ss:$16 sps:$4 sm:$0xff]  }
 0x892   :  { %1204 = vadd.xlane.f32.xlu1 %v1200_v9  ;;  %v1201_v12 = vadd.f32 %v2993_v8, %v3703_v37  ;;  %v3089_v37 = vld [vmem:[#allocation9 + $0x28] ss:$16 sps:$4 sm:$0xff]   ;;  %1484 = vmatprep.subr.bf16.mxu0 %v3094_v38  ;;  %v3129_v38 = vld [vmem:[#allocation11 + $0xc0] sm:$0xff]  }
 0x893   :  { %1536 = vmatpush1.bf16.msra.mxu1 %v3089_v37 }
 0x894   :  { %1206 = vadd.xlane.f32.xlu0 %v1201_v12  ;;  %1537 = vmatprep.subr.bf16.mxu1 %v3097_v15  ;;  %v3130_v15 = vld [vmem:[#allocation11] sm:$0xff]  }
 0x895   :  { %1485 = vmatpush1.bf16.msra.mxu0 %v3092_v45  ;;  %v3131_v45 = vld [vmem:[#allocation11 + $0x80] sm:$0xff]  }
 0x896   :  { %1208 = vadd.xlane.f32.xlu1 %v1202_v13  ;;  %1486 = vmatprep.subr.bf16.mxu0 %v3100_v41  ;;  %v3133_v41 = vld [vmem:[#allocation11 + $0xc8] sm:$0xff]  }
 0x897   :  { %1538 = vmatpush1.bf16.msra.mxu1 %v3095_v46  ;;  %v3132_v46 = vld [vmem:[#allocation11 + $0x48] sm:$0xff]  }
 0x898   :  { %1210 = vadd.xlane.f32.xlu0 %v1203_v14  ;;  %1539 = vmatprep.subr.bf16.mxu1 %v3103_v42  ;;  %v3134_v42 = vld [vmem:[#allocation11 + $0x8] sm:$0xff]  }
 0x899   :  { %1487 = vmatpush1.bf16.msra.mxu0 %v3098_v47  ;;  %v3135_v47 = vld [vmem:[#allocation11 + $0x88] sm:$0xff]  }
 0x89a   :  { %1488 = vmatprep.subr.bf16.mxu0 %v3106_v49  ;;  %v3137_v49 = vld [vmem:[#allocation11 + $0xd0] sm:$0xff]  }
 0x89b   :  { %1540 = vmatpush1.bf16.msra.mxu1 %v3101_v48  ;;  %v3136_v48 = vld [vmem:[#allocation11 + $0x50] sm:$0xff]  }
 0x89c   :  { %1541 = vmatprep.subr.bf16.mxu1 %v3109_v50  ;;  %v3138_v50 = vld [vmem:[#allocation11 + $0x10] sm:$0xff]  }
 0x89d   :  { %1489 = vmatpush1.bf16.msra.mxu0 %v3104_v51  ;;  %v3139_v51 = vld [vmem:[#allocation11 + $0x90] sm:$0xff]  }
 0x89e   :  { %1490 = vmatprep.subr.bf16.mxu0 %v3112_v53  ;;  %v3141_v53 = vld [vmem:[#allocation11 + $0xd8] sm:$0xff]  }
 0x89f   :  { %1542 = vmatpush1.bf16.msra.mxu1 %v3107_v52  ;;  %v3140_v52 = vld [vmem:[#allocation11 + $0x58] sm:$0xff]  }
 0x8a0   :  { %1543 = vmatprep.subr.bf16.mxu1 %v3115_v54  ;;  %v3142_v54 = vld [vmem:[#allocation11 + $0x18] sm:$0xff]  }
 0x8a1   :  { %1491 = vmatpush1.bf16.msra.mxu0 %v3110_v55  ;;  %v3143_v55 = vld [vmem:[#allocation11 + $0x98] sm:$0xff]  }
 0x8a2   :  { %1492 = vmatprep.subr.bf16.mxu0 %v3118_v57  ;;  %v3145_v57 = vld [vmem:[#allocation11 + $0xe0] sm:$0xff]  }
 0x8a3   :  { %1544 = vmatpush1.bf16.msra.mxu1 %v3113_v56  ;;  %v3144_v56 = vld [vmem:[#allocation11 + $0x60] sm:$0xff]  }
 0x8a4   :  { %1545 = vmatprep.subr.bf16.mxu1 %v3121_v58  ;;  %v3146_v58 = vld [vmem:[#allocation11 + $0x20] sm:$0xff]  }
 0x8a5   :  { %1493 = vmatpush1.bf16.msra.mxu0 %v3116_v59  ;;  %v3147_v59 = vld [vmem:[#allocation11 + $0xa0] sm:$0xff]  }
 0x8a6   :  { %1494 = vmatprep.subr.bf16.mxu0 %v3124_v61  ;;  %v3149_v61 = vld [vmem:[#allocation11 + $0xe8] sm:$0xff]  }
 0x8a7   :  { %1546 = vmatpush1.bf16.msra.mxu1 %v3119_v60  ;;  %v3148_v60 = vld [vmem:[#allocation11 + $0x68] sm:$0xff]  }
 0x8a8   :  { %1547 = vmatprep.subr.bf16.mxu1 %v3127_v62  ;;  %v3150_v62 = vld [vmem:[#allocation11 + $0x28] sm:$0xff]  }
 0x8a9   :  { %1495 = vmatpush1.bf16.msra.mxu0 %v3122_v63  ;;  %v3151_v63 = vld [vmem:[#allocation11 + $0xa8] sm:$0xff]  }
 0x8ab   :  { %1548 = vmatpush1.bf16.msra.mxu1 %v3125_v0  ;;  %v3152_v0 = vld [vmem:[#allocation11 + $0x70] sm:$0xff]  }
 0x8ac   :  { %2866 = vmatprep.subr.bf16.mxu1 %v3129_v38 }
 0x91f   :  { %v1205_v43 = vpop.xlane.xlu1 %1204 }
 0x920   :  { %v1212_v24 = vmul.f32 0.0078125, %v1205_v43 }
 0x921   :  { %v1207_v44 = vpop.xlane.xlu0 %1206 }
 0x922   :  { %v3794_v26 = vsub.f32 %v1200_v9, %v1212_v24  ;;  %v1213_v27 = vmul.f32 0.0078125, %v1207_v44  ;;  %v1259_v44 = vrot.slane %v3692_v25, %v3652_v4 }
 0x923   :  { %v1209_v28 = vpop.xlane.xlu1 %1208 }
 0x924   :  { %v3796_v29 = vsub.f32 %v1201_v12, %v1213_v27  ;;  %v1214_v30 = vmul.f32 0.0078125, %v1209_v28  ;;  %v1220_v31 = vmul.f32 %v3794_v26, %v3794_v26 }
 0x925   :  { %v1211_v32 = vpop.xlane.xlu0 %1210 }
 0x926   :  { %v3800_v33 = vsub.f32 %v1202_v13, %v1214_v30  ;;  %v1215_v35 = vmul.f32 0.0078125, %v1211_v32  ;;  %1224 = vadd.xlane.f32.xlu1 %v1220_v31  ;;  %v1221_v39 = vmul.f32 %v3796_v29, %v3796_v29 }
 0x928   :  { %v3804_v20 = vsub.f32 %v1203_v14, %v1215_v35  ;;  %1226 = vadd.xlane.f32.xlu0 %v1221_v39  ;;  %v1222_v40 = vmul.f32 %v3800_v33, %v3800_v33 }
 0x92a   :  { %1228 = vadd.xlane.f32.xlu1 %v1222_v40  ;;  %v1223_v34 = vmul.f32 %v3804_v20, %v3804_v20 }
 0x92c   :  { %1230 = vadd.xlane.f32.xlu0 %v1223_v34 }
 0x9b3   :  { %v1225_v6 = vpop.xlane.xlu1 %1224 }
 0x9b4   :  { %v1232_v7 = vmul.f32 0.0078125, %v1225_v6  ;;  %v3153_v6 = vld [vmem:[#allocation11 + $0xf0] sm:$0xff]  }
 0x9b5   :  { %v1227_v8 = vpop.xlane.xlu0 %1226 }
 0x9b6   :  { %v1236_v9 = vadd.f32 1e-12, %v1232_v7  ;;  %v1233_v11 = vmul.f32 0.0078125, %v1227_v8  ;;  %v3154_v7 = vld [vmem:[#allocation11 + $0x30] sm:$0xff]  }
 0x9b7   :  { %v1229_v12 = vpop.xlane.xlu1 %1228  ;;  %v3155_v8 = vld [vmem:[#allocation11 + $0xb0] sm:$0xff]  }
 0x9b8   :  { %3224 = vrsqrt.f32 %v1236_v9  ;;  %v1237_v13 = vadd.f32 1e-12, %v1233_v11  ;;  %v1234_v14 = vmul.f32 0.0078125, %v1229_v12  ;;  %v3156_v9 = vld [vmem:[#allocation11 + $0x78] sm:$0xff]  }
 0x9b9   :  { %v1231_v16 = vpop.xlane.xlu0 %1230  ;;  %v3157_v11 = vld [vmem:[#allocation11 + $0xf8] sm:$0xff]  }
 0x9ba   :  { %3226 = vrsqrt.f32 %v1237_v13  ;;  %v1238_v17 = vadd.f32 1e-12, %v1234_v14  ;;  %v1235_v18 = vmul.f32 0.0078125, %v1231_v16  ;;  %v3158_v12 = vld [vmem:[#allocation11 + $0x38] sm:$0xff]   ;;  %v1298_v14 = vld [vmem:[%s4248_s10] sm:$0xf] }
 0x9bb   :  { %v3159_v13 = vld [vmem:[#allocation11 + $0xb8] sm:$0xff]   ;;  %v3836_v16 = vrot.slane %v1298_v14, %v3649_v3 }
 0x9bc   :  { %3228 = vrsqrt.f32 %v1238_v17  ;;  %v1239_v21 = vadd.f32 1e-12, %v1235_v18  ;;  %v3839_v17 = vrot.slane %v1298_v14, %v3646_v2  ;;  %v3842_v18 = vrot.slane %v1298_v14, %v3655_v5 }
 0x9be   :  { %3230 = vrsqrt.f32 %v1239_v21  ;;  %v3845_v21 = vrot.slane %v1298_v14, %v3652_v4 }
 0x9c2   :  { %v3225_v23 = vpop.eup %3224 }
 0x9c3   :  { %v1244_v36 = vmul.f32 %v3225_v23, %v3794_v26 }
 0x9c4   :  { %v3227_v37 = vpop.eup %3226 }
 0x9c5   :  { %v1245_v43 = vmul.f32 %v3227_v37, %v3796_v29  ;;  %v1252_v24 = vmul.f32 %v1251_v22, %v1244_v36 }
 0x9c6   :  { %v3229_v27 = vpop.eup %3228 }
 0x9c7   :  { %v1253_v28 = vmul.f32 %v1251_v22, %v1245_v43  ;;  %v3816_v31 = vadd.f32 %v1259_v44, %v1252_v24  ;;  %v1246_v35 = vmul.f32 %v3229_v27, %v3800_v33 }
 0x9c8   :  { %v3231_v30 = vpop.eup %3230 }
 0x9c9   :  { %v3818_v32 = vadd.f32 %v1259_v44, %v1253_v28  ;;  %v1247_v39 = vmul.f32 %v3231_v30, %v3804_v20  ;;  %v1254_v29 = vmul.f32 %v1251_v22, %v1246_v35  ;;  %v3128_v20 = vld [vmem:[#allocation11 + $0x40] sm:$0xff]  }
 0x9ca   :  { %2838 = vmatprep.subr.bf16.mxu0 %v3128_v20 }
 0x9cb   :  { %v1264_v26 = vpack.c.bf16 %v3818_v32, %v3816_v31  ;;  %v1255_v40 = vmul.f32 %v1251_v22, %v1247_v39  ;;  %v3828_v34 = vadd.f32 %v1259_v44, %v1254_v29 }
 0x9cd   :  { %1513 = vmatmul.mubr.bf16.vlgmr.msra.gmra.mrb[12].mxu0 %v1264_v26  ;;  %1566 = vmatmul.mubr.bf16.vlgmr.msra.gmra.mrb[24].mxu1 %v1264_v26  ;;  %v3826_v25 = vadd.f32 %v1259_v44, %v1255_v40 }
 0x9ce   :  { %1522 = vmatprep.mubr.bf16.mxu0 %v3475_v10  ;;  %1575 = vmatprep.mubr.bf16.mxu1 %v3475_v10 }
 0x9cf   :  { %v1265_v33 = vpack.c.bf16 %v3826_v25, %v3828_v34  ;;  %2839 = vmatpush3.bf16.msra.mxu0 %v3130_v15  ;;  %2867 = vmatpush3.bf16.msra.mxu1 %v3131_v45 }
 0x9d0   :  { %2840 = vmatprep.subr.bf16.mxu0 %v3132_v46  ;;  %2868 = vmatprep.subr.bf16.mxu1 %v3133_v41 }
 0x9d3   :  { %2841 = vmatpush3.bf16.msra.mxu0 %v3134_v42  ;;  %2869 = vmatpush3.bf16.msra.mxu1 %v3135_v47 }
 0x9d4   :  { %2842 = vmatprep.subr.bf16.mxu0 %v3136_v48  ;;  %2870 = vmatprep.subr.bf16.mxu1 %v3137_v49 }
 0x9d5   :  { %1523 = vmatmul.mubr.bf16.gmra.mrb[16].mxu0 %v1265_v33  ;;  %1576 = vmatmul.mubr.bf16.gmra.mrb[28].mxu1 %v1265_v33 }
 0x9d7   :  { %2843 = vmatpush3.bf16.msra.mxu0 %v3138_v50  ;;  %2871 = vmatpush3.bf16.msra.mxu1 %v3139_v51 }
 0x9d8   :  { %2844 = vmatprep.subr.bf16.mxu0 %v3140_v52  ;;  %2872 = vmatprep.subr.bf16.mxu1 %v3141_v53 }
 0x9db   :  { %2845 = vmatpush3.bf16.msra.mxu0 %v3142_v54  ;;  %2873 = vmatpush3.bf16.msra.mxu1 %v3143_v55 }
 0x9dc   :  { %2846 = vmatprep.subr.bf16.mxu0 %v3144_v56  ;;  %2874 = vmatprep.subr.bf16.mxu1 %v3145_v57 }
 0x9df   :  { %2847 = vmatpush3.bf16.msra.mxu0 %v3146_v58  ;;  %2875 = vmatpush3.bf16.msra.mxu1 %v3147_v59 }
 0x9e0   :  { %2848 = vmatprep.subr.bf16.mxu0 %v3148_v60  ;;  %2876 = vmatprep.subr.bf16.mxu1 %v3149_v61 }
 0x9e3   :  { %2849 = vmatpush3.bf16.msra.mxu0 %v3150_v62  ;;  %2877 = vmatpush3.bf16.msra.mxu1 %v3151_v63 }
 0x9e4   :  { %2850 = vmatprep.subr.bf16.mxu0 %v3152_v0  ;;  %2878 = vmatprep.subr.bf16.mxu1 %v3153_v6 }
 0x9e7   :  { %2851 = vmatpush3.bf16.msra.mxu0 %v3154_v7  ;;  %2879 = vmatpush3.bf16.msra.mxu1 %v3155_v8 }
 0x9e8   :  { %2852 = vmatprep.subr.bf16.mxu0 %v3156_v9  ;;  %2880 = vmatprep.subr.bf16.mxu1 %v3157_v11 }
 0x9eb   :  { %2853 = vmatpush3.bf16.msra.mxu0 %v3158_v12  ;;  %2881 = vmatpush3.bf16.msra.mxu1 %v3159_v13 }
 0xaa0   :  { %v1514_v22 = vpop.f32.mrb[12].mxu0  ;;  %v1567_v23 = vpop.f32.mrb[24].mxu1 }
 0xaa1   :  { %v3848_v36 = vadd.f32 %v1514_v22, %v3836_v16  ;;  %v3851_v37 = vadd.f32 %v1567_v23, %v3839_v17  ;;  %v1516_v43 = vpop.f32.mrb[13].mxu0  ;;  %v1569_v24 = vpop.f32.mrb[25].mxu1 }
 0xaa2   :  { %v3854_v44 = vadd.f32 %v1516_v43, %v3842_v18  ;;  %v3857_v27 = vadd.f32 %v1569_v24, %v3845_v21  ;;  %v1518_v28 = vpop.f32.mrb[14].mxu0  ;;  %v1571_v30 = vpop.f32.mrb[26].mxu1 }
 0xaa3   :  { %v1586_v35 = vmul.f32 %v3848_v36, %v3848_v36  ;;  %v1588_v39 = vmul.f32 %v3851_v37, %v3851_v37  ;;  %v3864_v26 = vadd.f32 %v1518_v28, %v3836_v16  ;;  %v3867_v40 = vadd.f32 %v1571_v30, %v3839_v17  ;;  %v1520_v29 = vpop.f32.mrb[15].mxu0  ;;  %v1573_v33 = vpop.f32.mrb[27].mxu1 }
 0xaa4   :  { %v1587_v20 = vmul.f32 %v3854_v44, %v3854_v44  ;;  %v1589_v38 = vmul.f32 %v3857_v27, %v3857_v27  ;;  %v3874_v15 = vadd.f32 %v1520_v29, %v3842_v18  ;;  %v3877_v45 = vadd.f32 %v1573_v33, %v3845_v21 }
 0xaa5   :  { %v1602_v46 = vmul.f32 %v1586_v35, %v3848_v36  ;;  %v1604_v41 = vmul.f32 %v1588_v39, %v3851_v37  ;;  %v1590_v42 = vmul.f32 %v3864_v26, %v3864_v26  ;;  %v1592_v47 = vmul.f32 %v3867_v40, %v3867_v40 }
 0xaa6   :  { %v1603_v48 = vmul.f32 %v1587_v20, %v3854_v44  ;;  %v1605_v49 = vmul.f32 %v1589_v38, %v3857_v27  ;;  %v1591_v50 = vmul.f32 %v3874_v15, %v3874_v15  ;;  %v1593_v51 = vmul.f32 %v3877_v45, %v3877_v45 }
 0xaa7   :  { %v1618_v52 = vmul.f32 0.044715, %v1602_v46  ;;  %v1620_v53 = vmul.f32 0.044715, %v1604_v41  ;;  %v1606_v54 = vmul.f32 %v1590_v42, %v3864_v26  ;;  %v1608_v55 = vmul.f32 %v1592_v47, %v3867_v40 }
 0xaa8   :  { %v1619_v56 = vmul.f32 0.044715, %v1603_v48  ;;  %v1621_v57 = vmul.f32 0.044715, %v1605_v49  ;;  %v1607_v58 = vmul.f32 %v1591_v50, %v3874_v15  ;;  %v1609_v59 = vmul.f32 %v1593_v51, %v3877_v45  ;;  %v1524_v60 = vpop.f32.mrb[16].mxu0  ;;  %v1577_v61 = vpop.f32.mrb[28].mxu1 }
 0xaa9   :  { %v1634_v62 = vadd.f32 %v1618_v52, %v3848_v36  ;;  %v1636_v63 = vadd.f32 %v1620_v53, %v3851_v37  ;;  %v1622_v0 = vmul.f32 0.044715, %v1606_v54  ;;  %v1624_v6 = vmul.f32 0.044715, %v1608_v55  ;;  %v1526_v7 = vpop.f32.mrb[17].mxu0  ;;  %v1579_v8 = vpop.f32.mrb[29].mxu1 }
 0xaaa   :  { %v1635_v9 = vadd.f32 %v1619_v56, %v3854_v44  ;;  %v1637_v11 = vadd.f32 %v1621_v57, %v3857_v27  ;;  %v1623_v12 = vmul.f32 0.044715, %v1607_v58  ;;  %v1625_v13 = vmul.f32 0.044715, %v1609_v59  ;;  %v1528_v14 = vpop.f32.mrb[18].mxu0  ;;  %v1581_v22 = vpop.f32.mrb[30].mxu1 }
 0xaab   :  { %v1650_v23 = vmul.f32 0.7978846, %v1634_v62  ;;  %v1652_v43 = vmul.f32 0.7978846, %v1636_v63  ;;  %v1638_v24 = vadd.f32 %v1622_v0, %v3864_v26  ;;  %v1640_v28 = vadd.f32 %v1624_v6, %v3867_v40  ;;  %v1530_v30 = vpop.f32.mrb[19].mxu0  ;;  %v1583_v35 = vpop.f32.mrb[31].mxu1 }
 0xaac   :  { %v1651_v39 = vmul.f32 0.7978846, %v1635_v9  ;;  %v1653_v29 = vmul.f32 0.7978846, %v1637_v11  ;;  %v1639_v33 = vadd.f32 %v1623_v12, %v3874_v15  ;;  %v1641_v20 = vadd.f32 %v1625_v13, %v3877_v45 }
 0xaad   :  { %3232 = vtanh.f32 %v1650_v23  ;;  %v1654_v38 = vmul.f32 0.7978846, %v1638_v24  ;;  %v1656_v46 = vmul.f32 0.7978846, %v1640_v28  ;;  %v3904_v41 = vadd.f32 %v1524_v60, %v3836_v16 }
 0xaae   :  { %3234 = vtanh.f32 %v1652_v43  ;;  %v1655_v42 = vmul.f32 0.7978846, %v1639_v33  ;;  %v1657_v47 = vmul.f32 0.7978846, %v1641_v20  ;;  %v3907_v48 = vadd.f32 %v1577_v61, %v3839_v17 }
 0xaaf   :  { %3236 = vtanh.f32 %v1651_v39  ;;  %v1594_v49 = vmul.f32 %v3904_v41, %v3904_v41  ;;  %v3912_v50 = vadd.f32 %v1526_v7, %v3842_v18  ;;  %v3915_v51 = vadd.f32 %v1579_v8, %v3845_v21 }
 0xab0   :  { %3238 = vtanh.f32 %v1653_v29  ;;  %v1596_v52 = vmul.f32 %v3907_v48, %v3907_v48  ;;  %v3920_v53 = vadd.f32 %v1528_v14, %v3836_v16  ;;  %v3923_v54 = vadd.f32 %v1581_v22, %v3839_v17 }
 0xab1   :  { %3240 = vtanh.f32 %v1654_v38  ;;  %v1610_v55 = vmul.f32 %v1594_v49, %v3904_v41  ;;  %v1595_v56 = vmul.f32 %v3912_v50, %v3912_v50  ;;  %v1597_v57 = vmul.f32 %v3915_v51, %v3915_v51 }
 0xab2   :  { %3242 = vtanh.f32 %v1656_v46  ;;  %v1612_v58 = vmul.f32 %v1596_v52, %v3907_v48  ;;  %v1598_v59 = vmul.f32 %v3920_v53, %v3920_v53  ;;  %v1600_v16 = vmul.f32 %v3923_v54, %v3923_v54 }
 0xab3   :  { %3244 = vtanh.f32 %v1655_v42  ;;  %v1626_v17 = vmul.f32 0.044715, %v1610_v55  ;;  %v1611_v60 = vmul.f32 %v1595_v56, %v3912_v50  ;;  %v1613_v61 = vmul.f32 %v1597_v57, %v3915_v51 }
 0xab4   :  { %3246 = vtanh.f32 %v1657_v47  ;;  %v1628_v62 = vmul.f32 0.044715, %v1612_v58  ;;  %v1614_v63 = vmul.f32 %v1598_v59, %v3920_v53  ;;  %v1616_v0 = vmul.f32 %v1600_v16, %v3923_v54 }
 0xab5   :  { %v1642_v6 = vadd.f32 %v1626_v17, %v3904_v41  ;;  %v1627_v7 = vmul.f32 0.044715, %v1611_v60  ;;  %v1629_v8 = vmul.f32 0.044715, %v1613_v61  ;;  %v3941_v9 = vadd.f32 %v1530_v30, %v3842_v18 }
 0xab6   :  { %v1644_v11 = vadd.f32 %v1628_v62, %v3907_v48  ;;  %v1630_v12 = vmul.f32 0.044715, %v1614_v63  ;;  %v1632_v13 = vmul.f32 0.044715, %v1616_v0  ;;  %v3945_v14 = vadd.f32 %v1583_v35, %v3845_v21 }
 0xab7   :  { %v3233_v22 = vpop.eup %3232  ;;  %v1658_v23 = vmul.f32 0.7978846, %v1642_v6  ;;  %v1643_v43 = vadd.f32 %v1627_v7, %v3912_v50  ;;  %v1645_v24 = vadd.f32 %v1629_v8, %v3915_v51  ;;  %v1599_v28 = vmul.f32 %v3941_v9, %v3941_v9 }
 0xab8   :  { %v3235_v39 = vpop.eup %3234  ;;  %v1682_v29 = vadd.f32 1.0, %v3233_v22  ;;  %v1660_v18 = vmul.f32 0.7978846, %v1644_v11  ;;  %v1646_v30 = vadd.f32 %v1630_v12, %v3920_v53  ;;  %v1648_v33 = vadd.f32 %v1632_v13, %v3923_v54 }
 0xab9   :  { %v3237_v20 = vpop.eup %3236  ;;  %v1684_v38 = vadd.f32 1.0, %v3235_v39  ;;  %3248 = vtanh.f32 %v1658_v23  ;;  %v1659_v21 = vmul.f32 0.7978846, %v1643_v43  ;;  %v1661_v35 = vmul.f32 0.7978846, %v1645_v24 }
 0xaba   :  { %v3239_v46 = vpop.eup %3238  ;;  %v1698_v42 = vmul.f32 0.5, %v1682_v29  ;;  %3250 = vtanh.f32 %v1660_v18  ;;  %v1662_v47 = vmul.f32 0.7978846, %v1646_v30  ;;  %v1664_v49 = vmul.f32 0.7978846, %v1648_v33 }
 0xabb   :  { %v3241_v52 = vpop.eup %3240  ;;  %v1700_v55 = vmul.f32 0.5, %v1684_v38  ;;  %3252 = vtanh.f32 %v1659_v21  ;;  %v1615_v56 = vmul.f32 %v1599_v28, %v3941_v9  ;;  %v1601_v57 = vmul.f32 %v3945_v14, %v3945_v14 }
 0xabc   :  { %v3243_v58 = vpop.eup %3242  ;;  %v1714_v59 = vmul.f32 %v1698_v42, %v3848_v36  ;;  %v1686_v16 = vadd.f32 1.0, %v3241_v52  ;;  %3254 = vtanh.f32 %v1661_v35  ;;  %v1683_v17 = vadd.f32 1.0, %v3237_v20 }
 0xabd   :  { %v3245_v60 = vpop.eup %3244  ;;  %v1716_v61 = vmul.f32 %v1700_v55, %v3851_v37  ;;  %v1688_v62 = vadd.f32 1.0, %v3243_v58  ;;  %3256 = vtanh.f32 %v1662_v47  ;;  %v1631_v63 = vmul.f32 0.044715, %v1615_v56 }
 0xabe   :  { %v3247_v0 = vpop.eup %3246  ;;  %v1702_v6 = vmul.f32 0.5, %v1686_v16  ;;  %3258 = vtanh.f32 %v1664_v49  ;;  %v1617_v7 = vmul.f32 %v1601_v57, %v3945_v14  ;;  %v1687_v8 = vadd.f32 1.0, %v3245_v60 }
 0xabf   :  { %v1704_v11 = vmul.f32 0.5, %v1688_v62  ;;  %v1647_v12 = vadd.f32 %v1631_v63, %v3941_v9  ;;  %v1699_v13 = vmul.f32 0.5, %v1683_v17  ;;  %v1685_v36 = vadd.f32 1.0, %v3239_v46 }
 0xac0   :  { %v1718_v22 = vmul.f32 %v1702_v6, %v3864_v26  ;;  %v1633_v23 = vmul.f32 0.044715, %v1617_v7  ;;  %v1703_v43 = vmul.f32 0.5, %v1687_v8  ;;  %v1689_v24 = vadd.f32 1.0, %v3247_v0 }
 0xac1   :  { %v1720_v37 = vmul.f32 %v1704_v11, %v3867_v40  ;;  %v1663_v28 = vmul.f32 0.7978846, %v1647_v12  ;;  %v1715_v39 = vmul.f32 %v1699_v13, %v3854_v44  ;;  %v1701_v29 = vmul.f32 0.5, %v1685_v36 }
 0xac2   :  { %v1730_v18 = vpack.c.bf16 %v1718_v22, %v1714_v59  ;;  %v1649_v30 = vadd.f32 %v1633_v23, %v3945_v14  ;;  %v1719_v33 = vmul.f32 %v1703_v43, %v3874_v15  ;;  %v1705_v20 = vmul.f32 0.5, %v1689_v24 }
 0xac3   :  { %v3249_v38 = vpop.eup %3248  ;;  %v1732_v21 = vpack.c.bf16 %v1720_v37, %v1716_v61  ;;  %3260 = vtanh.f32 %v1663_v28  ;;  %v1717_v26 = vmul.f32 %v1701_v29, %v3857_v27 }
 0xac4   :  { %v3251_v35 = vpop.eup %3250  ;;  %v1665_v46 = vmul.f32 0.7978846, %v1649_v30  ;;  %v1731_v42 = vpack.c.bf16 %v1719_v33, %v1715_v39  ;;  %v1721_v40 = vmul.f32 %v1705_v20, %v3877_v45  ;;  %v1690_v47 = vadd.f32 1.0, %v3249_v38 }
 0xac5   :  { %v3253_v49 = vpop.eup %3252  ;;  %v1692_v44 = vadd.f32 1.0, %v3251_v35 }
 0xac6   :  { %v3255_v52 = vpop.eup %3254  ;;  %3262 = vtanh.f32 %v1665_v46  ;;  %2033 = vmatprep.mubr.bf16.mxu0 %v1731_v42  ;;  %v1733_v55 = vpack.c.bf16 %v1721_v40, %v1717_v26  ;;  %v1706_v58 = vmul.f32 0.5, %v1690_v47  ;;  %v1691_v16 = vadd.f32 1.0, %v3253_v49 }
 0xac7   :  { %v3257_v56 = vpop.eup %3256  ;;  %2034 = vmatmul.mubr.bf16.vlgmr.msra.gmra.mrb[20].mxu0 %v1730_v18  ;;  %v1708_v59 = vmul.f32 0.5, %v1692_v44  ;;  %v1693_v63 = vadd.f32 1.0, %v3255_v52 }
 0xac8   :  { %v3259_v15 = vpop.eup %3258  ;;  %2082 = vmatprep.mubr.bf16.mxu1 %v1733_v55  ;;  %v1694_v57 = vadd.f32 1.0, %v3257_v56  ;;  %v1722_v45 = vmul.f32 %v1706_v58, %v3904_v41  ;;  %v1707_v8 = vmul.f32 0.5, %v1691_v16 }
 0xac9   :  { %2083 = vmatmul.mubr.bf16.vlgmr.msra.gmra.mrb[32].mxu1 %v1732_v21  ;;  %v1696_v27 = vadd.f32 1.0, %v3259_v15  ;;  %v1724_v0 = vmul.f32 %v1708_v59, %v3907_v48  ;;  %v1709_v23 = vmul.f32 0.5, %v1693_v63  ;;  %v3160_v63 = vld [vmem:[%s4252_s14] ss:$8 sps:$4 sm:$0xff]  }
 0xaca   :  { %v1710_v17 = vmul.f32 0.5, %v1694_v57  ;;  %v1723_v43 = vmul.f32 %v1707_v8, %v3912_v50  ;;  %v2737_v50 = vld [vmem:[%s4250_s12] ss:$0 sm:$0xff] }
 0xacb   :  { %v1712_v60 = vmul.f32 0.5, %v1696_v27  ;;  %v1725_v37 = vmul.f32 %v1709_v23, %v3915_v51 }
 0xacc   :  { %v1726_v61 = vmul.f32 %v1710_v17, %v3920_v53 }
 0xacd   :  { %v3261_v62 = vpop.eup %3260  ;;  %v1728_v6 = vmul.f32 %v1712_v60, %v3923_v54 }
 0xace   :  { %v1695_v7 = vadd.f32 1.0, %v3261_v62  ;;  %v1734_v11 = vpack.c.bf16 %v1726_v61, %v1722_v45 }
 0xacf   :  { %v1736_v12 = vpack.c.bf16 %v1728_v6, %v1724_v0  ;;  %v3162_v0 = vld [vmem:[%s4252_s14 + $0x4] ss:$8 sps:$4 sm:$0xff]   ;;  %v3165_v6 = vld [vmem:[%s4252_s14 + $0x14] ss:$8 sps:$4 sm:$0xff]  }
 0xad0   :  { %v3263_v13 = vpop.eup %3262  ;;  %v1711_v36 = vmul.f32 0.5, %v1695_v7  ;;  %2273 = vmatprep.subr.bf16.mxu0 %v3162_v0 }
 0xad1   :  { %v1697_v22 = vadd.f32 1.0, %v3263_v13  ;;  %2274 = vmatpush1.bf16.msra.mxu0 %v3160_v63 }
 0xad2   :  { %v1727_v41 = vmul.f32 %v1711_v36, %v3941_v9  ;;  %2275 = vmatprep.subr.bf16.mxu0 %v3165_v6 }
 0xad3   :  { %v1713_v24 = vmul.f32 0.5, %v1697_v22 }
 0xad4   :  { %v1735_v53 = vpack.c.bf16 %v1727_v41, %v1723_v43 }
 0xad5   :  { %v1729_v48 = vmul.f32 %v1713_v24, %v3945_v14 }
 0xad6   :  { %2041 = vmatprep.mubr.bf16.mxu0 %v1735_v53 }
 0xad7   :  { %v1737_v54 = vpack.c.bf16 %v1729_v48, %v1725_v37  ;;  %2042 = vmatmul.mubr.bf16.gmra.mrb[24].mxu0 %v1734_v11 }
 0xad8   :  { %2305 = vmatprep.mubr.bf16.mxu0 %v3475_v10 }
 0xad9   :  { %2090 = vmatprep.mubr.bf16.mxu1 %v1737_v54 }
 0xada   :  { %2091 = vmatmul.mubr.bf16.gmra.mrb[36].mxu1 %v1736_v12 }
 0xb9a   :  { %v2854_v28 = vpop.f32.mrb[20].mxu0 }
 0xb9b   :  { %v2855_v39 = vpop.f32.mrb[21].mxu0 }
 0xb9c   :  { %v2882_v9 = vpop.f32.mrb[32].mxu1  ;;  %v2856_v29 = vadd.f32 %v2855_v39, %v2854_v28  ;;  %v2857_v18 = vpop.f32.mrb[22].mxu0  ;;  %v3168_v28 = vld [vmem:[%s4252_s14 + $0x24] ss:$8 sps:$4 sm:$0xff]   ;;  %v3171_v39 = vld [vmem:[%s4252_s14 + $0x34] ss:$8 sps:$4 sm:$0xff]  }
 0xb9d   :  { %v2883_v30 = vpop.f32.mrb[33].mxu1  ;;  %v2858_v51 = vpop.f32.mrb[23].mxu0 }
 0xb9e   :  { %v2036_v33 = vadd.f32 %v2856_v29, %v2737_v50  ;;  %v2884_v14 = vadd.f32 %v2883_v30, %v2882_v9  ;;  %v2885_v20 = vpop.f32.mrb[34].mxu1  ;;  %v2859_v38 = vadd.f32 %v2858_v51, %v2857_v18  ;;  %v3169_v9 = vld [vmem:[%s4252_s14 + $0x30] ss:$8 sps:$4 sm:$0xff]   ;;  %v3174_v29 = vld [vmem:[%s4252_s14 + $0x44] ss:$8 sps:$4 sm:$0xff]  }
 0xb9f   :  { %v2886_v21 = vpop.f32.mrb[35].mxu1  ;;  %v3172_v18 = vld [vmem:[%s4252_s14 + $0x40] ss:$8 sps:$4 sm:$0xff]   ;;  %v3177_v30 = vld [vmem:[%s4252_s14 + $0x54] ss:$8 sps:$4 sm:$0xff]  }
 0xba0   :  { %v2085_v26 = vadd.f32 %v2884_v14, %v2036_v33  ;;  %v2039_v35 = vadd.f32 %v2859_v38, %v2737_v50  ;;  %v2887_v46 = vadd.f32 %v2886_v21, %v2885_v20  ;;  %v3175_v51 = vld [vmem:[%s4252_s14 + $0x50] ss:$8 sps:$4 sm:$0xff]   ;;  %v3180_v33 = vld [vmem:[%s4252_s14 + $0x64] ss:$8 sps:$4 sm:$0xff]   ;;  %v3178_v14 = vld [vmem:[%s4252_s14 + $0x60] ss:$8 sps:$4 sm:$0xff]  }
 0xba1   :  { %v3183_v20 = vld [vmem:[%s4252_s14 + $0x74] ss:$8 sps:$4 sm:$0xff]   ;;  %v3181_v38 = vld [vmem:[%s4252_s14 + $0x70] ss:$8 sps:$4 sm:$0xff]   ;;  %v4046_v21 = vld [vmem:[%s4260_s6] sm:$0xf] }
 0xba2   :  { %v2088_v42 = vadd.f32 %v2887_v46, %v2039_v35  ;;  %v2099_v40 = vadd.f32 %v2085_v26, %v3816_v31  ;;  %v2338_v26 = vrot.slane %v4046_v21, %v3649_v3  ;;  %v2345_v35 = vrot.slane %v4046_v21, %v3655_v5 }
 0xba3   :  { %v2352_v46 = vrot.slane %v4046_v21, %v3646_v2 }
 0xba4   :  { %2103 = vadd.xlane.f32.xlu1 %v2099_v40  ;;  %v2100_v47 = vadd.f32 %v2088_v42, %v3818_v32 }
 0xba6   :  { %2105 = vadd.xlane.f32.xlu0 %v2100_v47 }
 0xbaa   :  { %v2860_v49 = vpop.f32.mrb[24].mxu0 }
 0xbab   :  { %v2861_v44 = vpop.f32.mrb[25].mxu0 }
 0xbac   :  { %v2862_v52 = vadd.f32 %v2861_v44, %v2860_v49  ;;  %v2863_v55 = vpop.f32.mrb[26].mxu0 }
 0xbad   :  { %v2888_v56 = vpop.f32.mrb[36].mxu1  ;;  %v2864_v15 = vpop.f32.mrb[27].mxu0 }
 0xbae   :  { %v2044_v57 = vadd.f32 %v2862_v52, %v2737_v50  ;;  %v2889_v58 = vpop.f32.mrb[37].mxu1  ;;  %v2865_v27 = vadd.f32 %v2864_v15, %v2863_v55  ;;  %v2149_v55 = vsub.s32 4, %v3643_v1 }
 0xbaf   :  { %v2890_v59 = vadd.f32 %v2889_v58, %v2888_v56  ;;  %v2891_v16 = vpop.f32.mrb[38].mxu1  ;;  %v3308_v56 = vld [vmem:[%s4251_s13] sm:$0x3f] }
 0xbb0   :  { %v2047_v17 = vadd.f32 %v2865_v27, %v2737_v50  ;;  %v2892_v60 = vpop.f32.mrb[39].mxu1  ;;  %v3166_v50 = vld [vmem:[%s4252_s14 + $0x20] ss:$8 sps:$4 sm:$0xff]   ;;  %v2150_v15 = vrot.slane %v3308_v56, %v2149_v55 }
 0xbb1   :  { %v2093_v45 = vadd.f32 %v2890_v59, %v2044_v57  ;;  %v2893_v61 = vadd.f32 %v2892_v60, %v2891_v16  ;;  %v2157_v57 = vsub.s32 5, %v3643_v1 }
 0xbb3   :  { %v2096_v31 = vadd.f32 %v2893_v61, %v2047_v17  ;;  %v2101_v62 = vadd.f32 %v2093_v45, %v3828_v34  ;;  %v3163_v34 = vld [vmem:[%s4252_s14 + $0x10] ss:$8 sps:$4 sm:$0xff]   ;;  %v2158_v45 = vrot.slane %v3308_v56, %v2157_v57 }
 0xbb4   :  { %2276 = vmatpush1.bf16.msra.mxu0 %v3163_v34 }
 0xbb5   :  { %2107 = vadd.xlane.f32.xlu1 %v2101_v62  ;;  %v2102_v32 = vadd.f32 %v2096_v31, %v3826_v25  ;;  %2277 = vmatprep.subr.bf16.mxu0 %v3168_v28 }
 0xbb7   :  { %2109 = vadd.xlane.f32.xlu0 %v2102_v32 }
 0xbb8   :  { %2278 = vmatpush1.bf16.msra.mxu0 %v3166_v50 }
 0xbb9   :  { %2279 = vmatprep.subr.bf16.mxu0 %v3171_v39 }
 0xbbc   :  { %2280 = vmatpush1.bf16.msra.mxu0 %v3169_v9 }
 0xbbd   :  { %2281 = vmatprep.subr.bf16.mxu0 %v3174_v29 }
 0xbc0   :  { %2282 = vmatpush1.bf16.msra.mxu0 %v3172_v18 }
 0xbc1   :  { %2283 = vmatprep.subr.bf16.mxu0 %v3177_v30 }
 0xbc4   :  { %2284 = vmatpush1.bf16.msra.mxu0 %v3175_v51 }
 0xbc5   :  { %2285 = vmatprep.subr.bf16.mxu0 %v3180_v33 }
 0xbc8   :  { %2286 = vmatpush1.bf16.msra.mxu0 %v3178_v14 }
 0xbc9   :  { %2287 = vmatprep.subr.bf16.mxu0 %v3183_v20 }
 0xbcc   :  { %2288 = vmatpush1.bf16.msra.mxu0 %v3181_v38 }
 0xc31   :  { %v2104_v25 = vpop.xlane.xlu1 %2103 }
 0xc32   :  { %v2111_v7 = vmul.f32 0.0078125, %v2104_v25 }
 0xc33   :  { %v2106_v8 = vpop.xlane.xlu0 %2105 }
 0xc34   :  { %v2115_v11 = vsub.f32 %v2099_v40, %v2111_v7  ;;  %v2112_v12 = vmul.f32 0.0078125, %v2106_v8 }
 0xc36   :  { %v3995_v13 = vsub.f32 %v2100_v47, %v2112_v12  ;;  %v2119_v36 = vmul.f32 %v2115_v11, %v2115_v11 }
 0xc38   :  { %2123 = vadd.xlane.f32.xlu1 %v2119_v36  ;;  %v2120_v22 = vmul.f32 %v3995_v13, %v3995_v13 }
 0xc3a   :  { %2125 = vadd.xlane.f32.xlu0 %v2120_v22 }
 0xc42   :  { %v2108_v23 = vpop.xlane.xlu1 %2107 }
 0xc43   :  { %v2113_v43 = vmul.f32 0.0078125, %v2108_v23  ;;  %v2181_v23 = vld [vmem:[%s4253_s15] sm:$0x3] }
 0xc44   :  { %v2110_v41 = vpop.xlane.xlu0 %2109 }
 0xc45   :  { %v3999_v24 = vsub.f32 %v2101_v62, %v2113_v43  ;;  %v2114_v53 = vmul.f32 0.0078125, %v2110_v41  ;;  %v2186_v43 = vrot.slane %v2181_v23, %v3649_v3  ;;  %v3476_v3 = vmov 0.0  }
 0xc47   :  { %v4001_v37 = vsub.f32 %v2102_v32, %v2114_v53  ;;  %v2121_v48 = vmul.f32 %v3999_v24, %v3999_v24 }
 0xc49   :  { %2127 = vadd.xlane.f32.xlu1 %v2121_v48  ;;  %v2122_v54 = vmul.f32 %v4001_v37, %v4001_v37 }
 0xc4b   :  { %2129 = vadd.xlane.f32.xlu0 %v2122_v54 }
 0xc5a   :  { %2340 = vbcast.lane.b32.xlu1 %v2338_v26, 256 }
 0xc5e   :  { %2354 = vbcast.lane.b32.xlu1 %v2352_v46, 256 }
 0xc61   :  { %2347 = vbcast.lane.b32.xlu0 %v2345_v35, 256  ;;  %v2359_v35 = vrot.slane %v4046_v21, %v3652_v4 }
 0xcc5   :  { %v2124_v42 = vpop.xlane.xlu1 %2123 }
 0xcc6   :  { %v2131_v40 = vmul.f32 0.0078125, %v2124_v42 }
 0xcc7   :  { %v2126_v47 = vpop.xlane.xlu0 %2125 }
 0xcc8   :  { %v2135_v49 = vadd.f32 1e-12, %v2131_v40  ;;  %v2132_v44 = vmul.f32 0.0078125, %v2126_v47 }
 0xcca   :  { %3264 = vrsqrt.f32 %v2135_v49  ;;  %v2136_v52 = vadd.f32 1e-12, %v2132_v44 }
 0xccc   :  { %3266 = vrsqrt.f32 %v2136_v52 }
 0xcd4   :  { %v3265_v58 = vpop.eup %3264 }
 0xcd5   :  { %v2143_v2 = vmul.f32 %v3265_v58, %v2115_v11 }
 0xcd6   :  { %v3267_v27 = vpop.eup %3266  ;;  %v2128_v59 = vpop.xlane.xlu1 %2127 }
 0xcd7   :  { %v2151_v16 = vmul.f32 %v2150_v15, %v2143_v2  ;;  %v2144_v17 = vmul.f32 %v3267_v27, %v3995_v13  ;;  %v2133_v60 = vmul.f32 0.0078125, %v2128_v59 }
 0xcd8   :  { %v2130_v61 = vpop.xlane.xlu0 %2129 }
 0xcd9   :  { %v2152_v31 = vmul.f32 %v2150_v15, %v2144_v17  ;;  %v2137_v62 = vadd.f32 1e-12, %v2133_v60  ;;  %v2134_v32 = vmul.f32 0.0078125, %v2130_v61  ;;  %v2159_v0 = vadd.f32 %v2158_v45, %v2151_v16 }
 0xcda   :  { %v2341_v46 = vpop.permute.xlu1 %2340 }
 0xcdb   :  { %3268 = vrsqrt.f32 %v2137_v62  ;;  %v2138_v63 = vadd.f32 1e-12, %v2134_v32  ;;  %v2160_v6 = vadd.f32 %v2158_v45, %v2152_v31  ;;  %vm2363_vm14 = vcmp.eq.s32.totalorder %v3664_v19, %v2341_v46 }
 0xcdc   :  { %v2786_v42 = vsel %vm2363_vm14, 1.0, %v3476_v3 }
 0xcdd   :  { %3270 = vrsqrt.f32 %v2138_v63  ;;  %v2163_v34 = vpack.c.bf16 %v2160_v6, %v2159_v0 }
 0xcde   :  { %v2355_v40 = vpop.permute.xlu1 %2354 }
 0xcdf   :  { %2306 = vmatmul.mubr.bf16.vlgmr.msra.gmra.mrb[28].mxu0 %v2163_v34  ;;  %vm2365_vm15 = vcmp.eq.s32.totalorder %v3664_v19, %v2355_v40 }
 0xce0   :  { %2315 = vmatprep.mubr.bf16.mxu0 %v3475_v10  ;;  %v2190_v10 = vrot.slane %v2181_v23, %v3655_v5  ;;  %v2788_v44 = vsel %vm2365_vm15, 1.0, %v3476_v3 }
 0xce5   :  { %v3269_v1 = vpop.eup %3268 }
 0xce6   :  { %v2145_v25 = vmul.f32 %v3269_v1, %v3999_v24 }
 0xce7   :  { %v3271_v7 = vpop.eup %3270 }
 0xce8   :  { %v2146_v8 = vmul.f32 %v3271_v7, %v4001_v37  ;;  %v2153_v11 = vmul.f32 %v2150_v15, %v2145_v25  ;;  %v2348_v37 = vpop.permute.xlu0 %2347 }
 0xce9   :  { %vm2364_vm13 = vcmp.eq.s32.totalorder %v3664_v19, %v2348_v37 }
 0xcea   :  { %v2154_v12 = vmul.f32 %v2150_v15, %v2146_v8  ;;  %v2161_v13 = vadd.f32 %v2158_v45, %v2153_v11  ;;  %v2787_v5 = vsel %vm2364_vm13, 1.0, %v3476_v3 }
 0xcec   :  { %v2162_v36 = vadd.f32 %v2158_v45, %v2154_v12 }
 0xcee   :  { %v2164_v22 = vpack.c.bf16 %v2162_v36, %v2161_v13  ;;  %v4127_v13 = vld [vmem:[%s4241_s3] sm:$0xff]  ;;  %v4134_v36 = vld [vmem:[%s4241_s3 + $0x8] sm:$0xff] }
 0xcf0   :  { %2316 = vmatmul.mubr.bf16.gmra.mrb[32].mxu0 %v2164_v22  ;;  %v4141_v22 = vld [vmem:[%s4241_s3 + $0x10] sm:$0xff] }
 0xdb2   :  { %v2307_v41 = vpop.f32.mrb[28].mxu0 }
 0xdb3   :  { %v4068_v53 = vadd.f32 %v2307_v41, %v2186_v43  ;;  %v2309_v24 = vpop.f32.mrb[29].mxu0 }
 0xdb4   :  { %v2310_v48 = vadd.f32 %v2309_v24, %v2190_v10  ;;  %v2311_v54 = vpop.f32.mrb[30].mxu0  ;;  %v2443_v24 = vsel %vm2439_vm1, %v4141_v22, 0.0 }
 0xdb5   :  { %2326 = vst [vmem:[#allocation12] sm:$0xff] %v4068_v53  ;;  %v2312_v28 = vadd.f32 %v2311_v54, %v2186_v43  ;;  %v2313_v50 = vpop.f32.mrb[31].mxu0  ;;  %2379 = vmax.xlane.f32.xlu1 %v4068_v53  ;;  %v2419_v47 = vmul.f32 %v2786_v42, %v4068_v53 }
 0xdb6   :  { %2327 = vst [vmem:[#allocation12 + $0x8] sm:$0xff] %v2310_v48  ;;  %v4072_v39 = vadd.f32 %v2313_v50, %v2190_v10  ;;  %v2519_v49 = vmul.f32 %v2786_v42, %v2310_v48 }
 0xdb7   :  { %2328 = vst [vmem:[#allocation12 + $0x10] sm:$0xff] %v2312_v28  ;;  %2381 = vmax.xlane.f32.xlu0 %v2312_v28  ;;  %v2420_v9 = vmul.f32 %v2787_v5, %v2312_v28 }
 0xdb8   :  { %2329 = vst [vmem:[#allocation12 + $0x18] sm:$0xff] %v4072_v39  ;;  %v2520_v26 = vmul.f32 %v2787_v5, %v4072_v39 }
 0xdb9   :  { %2479 = vmax.xlane.f32.xlu1 %v2310_v48 }
 0xdbb   :  { %2481 = vmax.xlane.f32.xlu0 %v4072_v39 }
 0xdbf   :  { %2425 = vadd.xlane.f32.xlu0 %v2420_v9 }
 0xdc3   :  { %v2317_v29 = vpop.f32.mrb[32].mxu0 }
 0xdc4   :  { %v4078_v18 = vadd.f32 %v2317_v29, %v2186_v43  ;;  %v2319_v30 = vpop.f32.mrb[33].mxu0 }
 0xdc5   :  { %v2320_v51 = vadd.f32 %v2319_v30, %v2190_v10  ;;  %v2321_v33 = vpop.f32.mrb[34].mxu0 }
 0xdc6   :  { %2330 = vst [vmem:[#allocation12 + $0x20] sm:$0xff] %v4078_v18  ;;  %v4081_v14 = vadd.f32 %v2321_v33, %v2186_v43  ;;  %v2323_v20 = vpop.f32.mrb[35].mxu0  ;;  %2383 = vmax.xlane.f32.xlu1 %v4078_v18  ;;  %v2421_v52 = vmul.f32 %v2788_v44, %v4078_v18  ;;  %v2440_v43 = vsel %vm2439_vm1, %v4127_v13, 0.0 }
 0xdc7   :  { %2331 = vst [vmem:[#allocation12 + $0x28] sm:$0xff] %v2320_v51  ;;  %v4084_v38 = vadd.f32 %v2323_v20, %v2190_v10  ;;  %v2521_v4 = vmul.f32 %v2788_v44, %v2320_v51  ;;  %v2441_v10 = vsel %vm2439_vm1, %v4134_v36, 0.0 }
 0xdc8   :  { %2332 = vst [vmem:[#allocation12 + $0x30] sm:$0xff] %v4081_v14  ;;  %2385 = vmax.xlane.f32.xlu0 %v4081_v14  ;;  %v2442_v41 = vadd.f32 %v2441_v10, %v2440_v43 }
 0xdc9   :  { %2333 = vst [vmem:[#allocation12 + $0x38] sm:$0xff] %v4084_v38 }
 0xdca   :  { %2483 = vmax.xlane.f32.xlu1 %v2320_v51  ;;  %v2444_v37 = vadd.f32 %v2443_v24, %v2442_v41 }
 0xdcc   :  { %2485 = vmax.xlane.f32.xlu0 %v4084_v38 }
 0xdd0   :  { %2525 = vadd.xlane.f32.xlu0 %v2520_v26 }
 0xddb   :  { %2361 = vbcast.lane.b32.xlu1 %v2359_v35, 256 }
 0xdff   :  { %2423 = vadd.xlane.f32.xlu1 %v2419_v47 }
 0xe03   :  { %2523 = vadd.xlane.f32.xlu1 %v2519_v49 }
 0xe07   :  { %2427 = vadd.xlane.f32.xlu1 %v2421_v52 }
 0xe0b   :  { %2527 = vadd.xlane.f32.xlu1 %v2521_v4 }
 0xe42   :  { %v4099_v21 = vpop.xlane.xlu1 %2379 }
 0xe43   :  { %v2387_v16 = vsub.f32 %v4068_v53, %v4099_v21 }
 0xe44   :  { %v4101_v55 = vpop.xlane.xlu0 %2381 }
 0xe45   :  { %v2388_v15 = vsub.f32 %v2312_v28, %v4101_v55  ;;  %v2391_v31 = vmul.f32 1.442695, %v2387_v16 }
 0xe46   :  { %v4103_v56 = vpop.xlane.xlu1 %2479 }
 0xe47   :  { %v2487_v57 = vsub.f32 %v2310_v48, %v4103_v56  ;;  %v2393_v2 = vmul.f32 1.442695, %v2388_v15  ;;  %v4158_v48 = vld [vmem:[%s4241_s3 + $0x18] sm:$0xff] }
 0xe48   :  { %v4111_v17 = vpop.xlane.xlu0 %2481  ;;  %v2445_v54 = vsel %vm2439_vm1, %v4158_v48, 0.0 }
 0xe49   :  { %v2491_v58 = vmul.f32 1.442695, %v2487_v57  ;;  %v2488_v62 = vsub.f32 %v4072_v39, %v4111_v17  ;;  %v2446_v39 = vadd.f32 %v2445_v54, %v2444_v37 }
 0xe4b   :  { %3272 = vpow2.f32 %v2491_v58  ;;  %v2493_v0 = vmul.f32 1.442695, %v2488_v62 }
 0xe4c   :  { %3274 = vpow2.f32 %v2393_v2  ;;  %v4145_v23 = vpop.xlane.xlu0 %2425 }
 0xe53   :  { %v4107_v27 = vpop.xlane.xlu1 %2383 }
 0xe54   :  { %v2389_v6 = vsub.f32 %v4078_v18, %v4107_v27 }
 0xe55   :  { %v3273_v59 = vpop.eup %3272  ;;  %v4151_v53 = vpop.xlane.xlu0 %2385 }
 0xe56   :  { %2499 = vadd.xlane.f32.xlu1 %v3273_v59  ;;  %v3275_v61 = vpop.eup %3274  ;;  %v2395_v25 = vmul.f32 1.442695, %v2389_v6  ;;  %v2390_v28 = vsub.f32 %v4081_v14, %v4151_v53 }
 0xe57   :  { %v4113_v60 = vpop.xlane.xlu1 %2483 }
 0xe58   :  { %v2489_v45 = vsub.f32 %v2320_v51, %v4113_v60 }
 0xe59   :  { %v4164_v50 = vpop.xlane.xlu0 %2485 }
 0xe5a   :  { %v2495_v32 = vmul.f32 1.442695, %v2489_v45  ;;  %2401 = vadd.xlane.f32.xlu1 %v3275_v61  ;;  %v2490_v5 = vsub.f32 %v4084_v38, %v4164_v50 }
 0xe5b   :  { %v2362_v63 = vpop.permute.xlu1 %2361 }
 0xe5c   :  { %3276 = vpow2.f32 %v2495_v32  ;;  %vm2366_vm0 = vcmp.eq.s32.totalorder %v3664_v19, %v2362_v63  ;;  %v2497_v9 = vmul.f32 1.442695, %v2490_v5 }
 0xe5d   :  { %3278 = vpow2.f32 %v2391_v31  ;;  %v2789_v34 = vsel %vm2366_vm0, 1.0, %v3476_v3  ;;  %v2397_v3 = vmul.f32 1.442695, %v2390_v28 }
 0xe5e   :  { %v2422_v1 = vmul.f32 %v2789_v34, %v4081_v14  ;;  %3280 = vpow2.f32 %v2493_v0  ;;  %v2522_v7 = vmul.f32 %v2789_v34, %v4084_v38  ;;  %v2526_v38 = vpop.xlane.xlu0 %2525 }
 0xe5f   :  { %3282 = vpow2.f32 %v2395_v25 }
 0xe60   :  { %2429 = vadd.xlane.f32.xlu0 %v2422_v1  ;;  %3284 = vpow2.f32 %v2397_v3 }
 0xe61   :  { %3286 = vpow2.f32 %v2497_v9 }
 0xe64   :  { %2529 = vadd.xlane.f32.xlu0 %v2522_v7 }
 0xe66   :  { %v3277_v8 = vpop.eup %3276 }
 0xe67   :  { %v3279_v11 = vpop.eup %3278  ;;  %2503 = vadd.xlane.f32.xlu1 %v3277_v8 }
 0xe68   :  { %2399 = vadd.xlane.f32.xlu0 %v3279_v11  ;;  %v3281_v19 = vpop.eup %3280 }
 0xe69   :  { %v3283_v12 = vpop.eup %3282 }
 0xe6a   :  { %v3285_v29 = vpop.eup %3284 }
 0xe6b   :  { %v3287_v18 = vpop.eup %3286 }
 0xe6c   :  { %2501 = vadd.xlane.f32.xlu0 %v3281_v19 }
 0xe70   :  { %2403 = vadd.xlane.f32.xlu0 %v3283_v12 }
 0xe78   :  { %2543 = vrot.lane.b32.xlu1 %v4127_v13, %s3477_s20 }
 0xe86   :  { %2545 = vrot.lane.b32.xlu0 %v4134_v36, %s3477_s20 }
 0xe8a   :  { %2547 = vrot.lane.b32.xlu0 %v4141_v22, %s3477_s20 }
 0xe8c   :  { %v4170_v30 = vpop.xlane.xlu1 %2423 }
 0xe90   :  { %v2524_v51 = vpop.xlane.xlu1 %2523 }
 0xe94   :  { %v4172_v33 = vpop.xlane.xlu1 %2427 }
 0xe98   :  { %v4174_v14 = vpop.xlane.xlu1 %2527 }
 0xe9c   :  { %2447 = vadd.xlane.f32.xlu1 %v2446_v39 }
 0xea9   :  { %2405 = vadd.xlane.f32.xlu0 %v3285_v29 }
 0xead   :  { %2505 = vadd.xlane.f32.xlu0 %v3287_v18 }
 0xec3   :  { %2549 = vrot.lane.b32.xlu0 %v4158_v48, %s3477_s20 }
 0xee3   :  { %v2500_v20 = vpop.xlane.xlu1 %2499 }
 0xee4   :  { %3288 = vlog2.f32 %v2500_v20 }
 0xeed   :  { %v4176_v26 = vpop.xlane.xlu0 %2429 }
 0xeee   :  { %v3289_v35 = vpop.eup %3288 }
 0xeef   :  { %v2508_v46 = vmul.f32 0.6931472, %v3289_v35 }
 0xef1   :  { %v2515_v42 = vadd.f32 %v2508_v46, %v4103_v56  ;;  %v4179_v40 = vpop.xlane.xlu0 %2529  ;;  %v2402_v56 = vpop.xlane.xlu1 %2401 }
 0xef3   :  { %v2531_v47 = vsub.f32 %v2515_v42, %v2524_v51 }
 0xef5   :  { %v2400_v49 = vpop.xlane.xlu0 %2399  ;;  %v2535_v44 = vmul.f32 %v2531_v47, %v4127_v13  ;;  %v2504_v59 = vpop.xlane.xlu1 %2503 }
 0xef7   :  { %2576 = vrot.lane.b32.xlu0 %v2535_v44, %s3477_s20 }
 0xef9   :  { %v2502_v52 = vpop.xlane.xlu0 %2501  ;;  %v2544_v16 = vpop.permute.xlu1 %2543 }
 0xefa   :  { %3290 = vlog2.f32 %v2502_v52  ;;  %v2555_v41 = vsel %vm2439_vm1, %v2544_v16, 0.0 }
 0xefb   :  { %3292 = vlog2.f32 %v2400_v49 }
 0xefc   :  { %3294 = vlog2.f32 %v2402_v56 }
 0xefd   :  { %v2404_v45 = vpop.xlane.xlu0 %2403 }
 0xefe   :  { %3296 = vlog2.f32 %v2404_v45 }
 0xf01   :  { %v2546_v62 = vpop.permute.xlu0 %2545 }
 0xf02   :  { %v2556_v10 = vsel %vm2439_vm1, %v2546_v62, 0.0 }
 0xf03   :  { %v2557_v3 = vadd.f32 %v2556_v10, %v2555_v41 }
 0xf04   :  { %v3291_v4 = vpop.eup %3290 }
 0xf05   :  { %v2510_v15 = vmul.f32 0.6931472, %v3291_v4  ;;  %v3293_v6 = vpop.eup %3292  ;;  %v2548_v34 = vpop.permute.xlu0 %2547 }
 0xf06   :  { %v2408_v7 = vmul.f32 0.6931472, %v3293_v6  ;;  %v2558_v28 = vsel %vm2439_vm1, %v2548_v34, 0.0 }
 0xf07   :  { %v2516_v57 = vadd.f32 %v2510_v15, %v4111_v17  ;;  %v3295_v17 = vpop.eup %3294  ;;  %v2559_v29 = vadd.f32 %v2558_v28, %v2557_v3 }
 0xf08   :  { %v3297_v25 = vpop.eup %3296  ;;  %v2410_v11 = vmul.f32 0.6931472, %v3295_v17  ;;  %v2415_v43 = vadd.f32 %v2408_v7, %v4099_v21 }
 0xf09   :  { %v2532_v58 = vsub.f32 %v2516_v57, %v2526_v38  ;;  %v2412_v19 = vmul.f32 0.6931472, %v3297_v25 }
 0xf0a   :  { %v2416_v24 = vadd.f32 %v2410_v11, %v4101_v55  ;;  %v2431_v39 = vsub.f32 %v2415_v43, %v4170_v30 }
 0xf0b   :  { %v2536_v2 = vmul.f32 %v2532_v58, %v4134_v36  ;;  %v2417_v37 = vadd.f32 %v2412_v19, %v4107_v27 }
 0xf0c   :  { %v2432_v5 = vsub.f32 %v2416_v24, %v4145_v23  ;;  %v2435_v20 = vmul.f32 %v2431_v39, %v4127_v13 }
 0xf0d   :  { %2578 = vrot.lane.b32.xlu0 %v2536_v2, %s3477_s20  ;;  %v2433_v9 = vsub.f32 %v2417_v37, %v4172_v33 }
 0xf0e   :  { %v2436_v35 = vmul.f32 %v2432_v5, %v4134_v36  ;;  %v2457_v23 = vsel %vm2439_vm1, %v2435_v20, 0.0 }
 0xf0f   :  { %v2437_v30 = vmul.f32 %v2433_v9, %v4141_v22 }
 0xf10   :  { %v2458_v47 = vsel %vm2439_vm1, %v2436_v35, 0.0 }
 0xf11   :  { %v2460_v49 = vsel %vm2439_vm1, %v2437_v30, 0.0  ;;  %v2459_v13 = vadd.f32 %v2458_v47, %v2457_v23 }
 0xf13   :  { %v2461_v36 = vadd.f32 %v2460_v49, %v2459_v13 }
 0xf29   :  { %v2448_v61 = vpop.xlane.xlu1 %2447 }
 0xf2a   :  { %v2449_v31 = vrot.slane %v2448_v61, 4 }
 0xf2c   :  { %v2450_v32 = vadd.f32 %v2449_v31, %v2448_v61 }
 0xf2e   :  { %v2451_v63 = vrot.slane %v2450_v32, 2 }
 0xf30   :  { %v2452_v0 = vadd.f32 %v2451_v63, %v2450_v32 }
 0xf32   :  { %v2453_v1 = vrot.slane %v2452_v0, 1 }
 0xf34   :  { %v2454_v8 = vadd.f32 %v2453_v1, %v2452_v0 }
 0xf36   :  { %v2406_v12 = vpop.xlane.xlu0 %2405  ;;  %3002 = vpush %v2454_v8 }
 0xf37   :  { %3298 = vlog2.f32 %v2406_v12 }
 0xf38   :  { %3300 = vlog2.f32 %v2504_v59 }
 0xf3a   :  { %v2506_v54 = vpop.xlane.xlu0 %2505 }
 0xf3b   :  { %3302 = vlog2.f32 %v2506_v54 }
 0xf3e   :  { %v2550_v21 = vpop.permute.xlu0 %2549 }
 0xf3f   :  { %v2560_v18 = vsel %vm2439_vm1, %v2550_v21, 0.0 }
 0xf40   :  { %v2561_v51 = vadd.f32 %v2560_v18, %v2559_v29 }
 0xf41   :  { %v3299_v55 = vpop.eup %3298 }
 0xf42   :  { %v3301_v38 = vpop.eup %3300  ;;  %v2414_v27 = vmul.f32 0.6931472, %v3299_v55  ;;  %2562 = vadd.xlane.f32.xlu1 %v2561_v51 }
 0xf43   :  { %v2512_v33 = vmul.f32 0.6931472, %v3301_v38 }
 0xf44   :  { %v2418_v46 = vadd.f32 %v2414_v27, %v4151_v53 }
 0xf45   :  { %v2517_v52 = vadd.f32 %v2512_v33, %v4113_v60 }
 0xf46   :  { %v2434_v42 = vsub.f32 %v2418_v46, %v4176_v26  ;;  %v3303_v26 = vpop.eup %3302 }
 0xf47   :  { %v2533_v53 = vsub.f32 %v2517_v52, %v4174_v14  ;;  %v2514_v58 = vmul.f32 0.6931472, %v3303_v26 }
 0xf48   :  { %v2438_v44 = vmul.f32 %v2434_v42, %v4158_v48 }
 0xf49   :  { %v2537_v57 = vmul.f32 %v2533_v53, %v4141_v22  ;;  %v2518_v2 = vadd.f32 %v2514_v58, %v4164_v50 }
 0xf4a   :  { %v2462_v4 = vsel %vm2439_vm1, %v2438_v44, 0.0 }
 0xf4b   :  { %v2463_v15 = vadd.f32 %v2462_v4, %v2461_v36  ;;  %v2534_v56 = vsub.f32 %v2518_v2, %v4179_v40 }
 0xf4d   :  { %2464 = vadd.xlane.f32.xlu0 %v2463_v15  ;;  %v2538_v59 = vmul.f32 %v2534_v56, %v4158_v48 }
 0xf53   :  { %2580 = vrot.lane.b32.xlu1 %v2537_v57, %s3477_s20 }
 0xf63   :  { %2582 = vrot.lane.b32.xlu0 %v2538_v59, %s3477_s20 }
 0xf67   :  { %s3003_s3 = spop %3002 }
 0xf68   :  { %s2456_s10 = smax.f32 %s3478_s29, %s3003_s3 }
 0xf69   :  { %v2577_v16 = vpop.permute.xlu0 %2576  ;;  %v2473_v31 = vstv %s2456_s10 }
 0xf6a   :  { %v2588_v50 = vsel %vm2439_vm1, %v2577_v16, 0.0  ;;  %3304 = vrcp.f32 %v2473_v31 }
 0xf74   :  { %v3305_v43 = vpop.eup %3304 }
 0xf7f   :  { %v2579_v22 = vpop.permute.xlu0 %2578 }
 0xf80   :  { %v2589_v62 = vsel %vm2439_vm1, %v2579_v22, 0.0 }
 0xf81   :  { %v2590_v0 = vadd.f32 %v2589_v62, %v2588_v50 }
 0xfcf   :  { %v2563_v60 = vpop.xlane.xlu1 %2562 }
 0xfd0   :  { %v2564_v45 = vrot.slane %v2563_v60, 4 }
 0xfd2   :  { %v2565_v14 = vadd.f32 %v2564_v45, %v2563_v60 }
 0xfd3   :  { %v2581_v61 = vpop.permute.xlu1 %2580 }
 0xfd4   :  { %v2566_v32 = vrot.slane %v2565_v14, 2  ;;  %v2591_v48 = vsel %vm2439_vm1, %v2581_v61, 0.0 }
 0xfd5   :  { %v2592_v17 = vadd.f32 %v2591_v48, %v2590_v0 }
 0xfd6   :  { %v2567_v7 = vadd.f32 %v2566_v32, %v2565_v14 }
 0xfd8   :  { %v2568_v12 = vrot.slane %v2567_v7, 1 }
 0xfda   :  { %v2465_v40 = vpop.xlane.xlu0 %2464  ;;  %v2569_v41 = vadd.f32 %v2568_v12, %v2567_v7 }
 0xfdb   :  { %v2466_v63 = vrot.slane %v2465_v40, 4 }
 0xfdd   :  { %v2467_v6 = vadd.f32 %v2466_v63, %v2465_v40 }
 0xfde   :  { %v2583_v34 = vpop.permute.xlu0 %2582 }
 0xfdf   :  { %v2468_v1 = vrot.slane %v2467_v6, 2  ;;  %v2593_v25 = vsel %vm2439_vm1, %v2583_v34, 0.0 }
 0xfe0   :  { %v2594_v8 = vadd.f32 %v2593_v25, %v2592_v17 }
 0xfe1   :  { %v2469_v11 = vadd.f32 %v2468_v1, %v2467_v6 }
 0xfe2   :  { %2595 = vadd.xlane.f32.xlu1 %v2594_v8 }
 0xfe3   :  { %v2470_v19 = vrot.slane %v2469_v11, 1 }
 0xfe5   :  { %v2471_v10 = vadd.f32 %v2470_v19, %v2469_v11 }
 0xfe7   :  { %3004 = vpush %v2471_v10 }
 0xfe8   :  { %3006 = vpush %v3305_v43 }
 0xfe9   :  { %3008 = vpush %v2569_v41 }
0x1018   :  { %s3005_s0 = spop %3004 }
0x1019   :  { %s3007_s12 = spop %3006 }
0x101a   :  { %s2476_s7 = smul.f32 %s3007_s12, %s3005_s0 }
0x101c   :  { %2478 = sst [smem:[#allocation13]] %s2476_s7 }
0x101d   :  { %3430 = shalt.err (!%p3427_p2)
}
0x101e   :  { %s3431_s18 = scalar_lea.hbm %s4254_s16, 1024 }
0x101f   :  { %p3432_p3 = scmp.ne.s32.totalorder %s4254_s16, %s3431_s18  ;;  %p3435_p4 = scmp.lt.u32.totalorder %s3431_s18, %s4254_s16 }
0x1021   :  { %p3437_p5 = pnand %p3435_p4, %p3432_p3 }
0x1023   :  { %3440 = shalt.err (!%p3437_p5)
}
0x1024   :  { %s4261_s19 = smov 256   ;;  %s3009_s15 = spop %3008 }
0x1025   :  { %2621 = dma.vmem_to_hbm [thread:$0]  %s2616_s11, 1024, %s4254_s16, [#allocation4], %s4261_s19, %s4261_s19, %s3468_s25  }
0x1026   :  { %s2571_s5 = smax.f32 %s3478_s29, %s3009_s15  ;;  %s2628_s27 = sshll.u32 %s4255_s17, 4  ;;  %s2629_s27 = int_to_ptr.vmem [resolvable:$true] %s2628_s27 }
0x1027   :  { %v2604_v24 = vstv %s2571_s5  ;;  %s3441_s2 = scalar_lea.vmem %s2629_s27, 16  ;;  %p3446_p7 = scmp.lt.s32.totalorder %s2629_s27, %s2629_s27 }
0x1028   :  { %3306 = vrcp.f32 %v2604_v24  ;;  %p3442_p6 = scmp.ne.s32.totalorder %s2629_s27, %s3441_s2  ;;  %p3447_p8 = scmp.lt.s32.totalorder %s3441_s2, %s3441_s2 }
0x102a   :  { %p3448_p9 = por %p3447_p8, %p3446_p7 }
0x102c   :  { %p3449_p10 = pnand %p3448_p9, %p3442_p6 }
0x1032   :  { %v3307_v29 = vpop.eup %3306 }
0x106f   :  { %v2596_v37 = vpop.xlane.xlu1 %2595 }
0x1070   :  { %v2597_v54 = vrot.slane %v2596_v37, 4 }
0x1072   :  { %v2598_v28 = vadd.f32 %v2597_v54, %v2596_v37 }
0x1074   :  { %v2599_v39 = vrot.slane %v2598_v28, 2 }
0x1076   :  { %v2600_v3 = vadd.f32 %v2599_v39, %v2598_v28 }
0x1078   :  { %v2601_v5 = vrot.slane %v2600_v3, 1 }
0x107a   :  { %v2602_v9 = vadd.f32 %v2601_v5, %v2600_v3 }
0x107c   :  { %3010 = vpush %v2602_v9 }
0x107d   :  { %3012 = vpush %v3307_v29 }
0x10ad   :  { %s3011_s16 = spop %3010 }
0x10ae   :  { %s3013_s25 = spop %3012 }
0x10af   :  { %s2607_s28 = smul.f32 %s3013_s25, %s3011_s16 }
0x10b1   :  { %2609 = sst [smem:[#allocation13 + $0x1]] %s2607_s28 }
0x10b2   :  { %3452 = shalt.err (!%p3449_p10)
}
0x10b3   :  { %s3480_s9 = smov [#allocation13]  }
0x10b4   :  { %2631 = dma.smem_to_vmem %s3480_s9, 16, %s2629_s27, [#allocation5]  }
0x10b5   :  { %3459 = dma.done.wait [#allocation4], 1024  }
0x10b6   :  { %3460 = vsyncadd [#allocation4], 4294966272 }
0x10b7   :  { %3461 = dma.done.wait [#allocation5], 16  }
0x10b8   :  { %3462 = vsyncadd [#allocation5], 4294967280 }
0x10b9   :  { %2638 = sfence }
0x10ba   :  { %2639 = vsyncpa [#allocation3], 1 }
0x10bb   :  { %2640 = vsyncpa [#allocation7], 1 }
0x10bc   :  { %2641 = vsyncpa [#allocation10], 1 }
0x10bd   :  { %2642 = vsyncpa [#allocation4], 1 }
0x10be   :  { %2643 = vsyncpa [#allocation5], 1 }

</bundles_post_ra>
